<compile_context>
chip_gen: v7x
topology: tpu7x:2x2x1
jax: 0.10.0
libtpu: 0.0.40
codegen_flags: <defaults>
</compile_context>

<pallas_src>
import functools
import math

import jax
import jax.numpy as jnp
from jax import lax
from jax.experimental import pallas as pl
from jax.experimental.pallas import tpu as pltpu

_HIGHEST = lax.Precision.HIGHEST   # one-shot hoisted projections / head
_DEFAULT = lax.Precision.DEFAULT   # serial recurrence dots (latency critical)
_VMEM = pl.BlockSpec(memory_space=pltpu.MemorySpace.VMEM)

_BP = 8   # padded batch = one sublane tile


# ------------------------------ fused Pallas kernel ------------------------------ #

def _fused_lstm_kernel(x_ref, w1_ref, slab_ref, out_ref, h1seq_scr, *, T, BP, H, HD):
    """Fused bi-LSTM -> LSTM -> normalized-linear head.

    x_ref:      (T*BP, Din)  time-major, batch-padded input
    w1_ref:     (Din, 2G)    fused layer-1 input weights [fwd gates | bwd gates], G = 4H
    slab_ref:   (4H+2, G)    row-stacked weights/biases:
                             [0:H)   whh1   layer-1 hidden weights (fwd rows | bwd rows)
                             [H:2H)  whh2   layer-2 hidden weights
                             [2H:3H) w2t    layer-2 input weights
                             [3H:4H) wnt    row-normalized head weight, lane-padded
                             [4H]    b1     layer-1 combined bias
                             [4H+1]  b2     layer-2 combined bias
    out_ref:    (BP, G)      packed output slab: lanes 0:H = rep, lanes H:H+C = sigmoid
    h1seq_scr:  (T*BP, H)    layer-1 hidden sequence [h_fwd(t) | h_bwd(t)]
    """
    f32 = jnp.float32
    G = 4 * H

    def lstm_cell(gates, c_prev):
        # gate layout: [i | f | g | o], each H lanes wide
        sg = jax.nn.sigmoid(gates)                    # one EUP pass covers i, f, o
        i = sg[:, 0:H]
        f = sg[:, H:2 * H]
        o = sg[:, 3 * H:4 * H]
        g = jnp.tanh(gates[:, 2 * H:3 * H])
        c_new = f * c_prev + i * g
        h_new = o * jnp.tanh(c_new)
        return h_new, c_new

    # ---------------- layer 1: bidirectional LSTM, fwd+bwd fused in one loop ---------------- #
    # single fused input projection (256-wide N -> one native MXU pass on v6e/v7x)
    p1 = jnp.dot(x_ref[...], w1_ref[...], precision=_HIGHEST,
                 preferred_element_type=f32)                              # (T*BP, 2G)
    b1 = slab_ref[4 * H:4 * H + 1, :]                                     # (1, G)
    pf = p1[:, 0:G] + b1                                                  # fwd gates (+bias)
    pb = p1[:, G:2 * G]                                                   # bwd gates

    whh1 = slab_ref[0:H, :]                                               # (H, G)
    h1 = jnp.zeros((BP, H), f32)          # [h_fwd | h_bwd]
    c1 = jnp.zeros((BP, H), f32)
    for t in range(T):                    # static unroll (T small & fixed)
        r = T - 1 - t                     # reversed index for the backward direction
        xin = pf[t * BP:(t + 1) * BP, :] + pb[r * BP:(r + 1) * BP, :]     # aligned 8-row slices
        gates = xin + jnp.dot(h1, whh1, precision=_DEFAULT,
                              preferred_element_type=f32)
        h1, c1 = lstm_cell(gates, c1)
        # fwd half of h1 is valid for time t, bwd half for time r
        h1seq_scr[t * BP:(t + 1) * BP, 0:HD] = h1[:, 0:HD]
        h1seq_scr[r * BP:(r + 1) * BP, HD:H] = h1[:, HD:H]

    # ---------------- layer 2: unidirectional LSTM (only final h needed) ---------------- #
    w2t = slab_ref[2 * H:3 * H, :]                                        # (H, G)
    b2 = slab_ref[4 * H + 1:4 * H + 2, :]                                 # (1, G)
    p2 = jnp.dot(h1seq_scr[...], w2t, precision=_HIGHEST,
                 preferred_element_type=f32) + b2                         # (T*BP, G)

    whh2 = slab_ref[H:2 * H, :]                                           # (H, G)
    h2 = jnp.zeros((BP, H), f32)
    c2 = jnp.zeros((BP, H), f32)
    for t in range(T):
        gates = p2[t * BP:(t + 1) * BP, :] + jnp.dot(h2, whh2, precision=_DEFAULT,
                                                     preferred_element_type=f32)
        h2, c2 = lstm_cell(gates, c2)

    # ------------------------ head: L2-norm + Linear_norm + sigmoid ------------------------ #
    nrm = jnp.sqrt(jnp.sum(h2 * h2, axis=1, keepdims=True))
    rep = h2 / jnp.maximum(nrm, 1e-12)
    wnt = slab_ref[3 * H:4 * H, :]                                        # (H, G) lane-padded
    logits = jnp.dot(rep, wnt, precision=_HIGHEST,
                     preferred_element_type=f32)                          # valid lanes 0:C
    sig = jax.nn.sigmoid(logits)

    # lane-dense packed output slab: [ rep (0:H) | sigmoid (H:2H, valid lanes H:H+C) | 0 ]
    out_ref[...] = jnp.zeros((BP, G), f32)
    out_ref[:, 0:H] = rep
    out_ref[:, H:2 * H] = sig[:, 0:H]


# --------------------------- parameter prep (done once) --------------------------- #

def prepare_kernel_params(p, input_dim, hidden_dim, num_classes):
    """Pre-transpose / fuse torch-shaped weights into two kernel-friendly slabs."""
    del input_dim
    f32 = jnp.float32
    H = hidden_dim
    HD = H // 2                    # per-direction hidden of the bidirectional layer
    G = 4 * H                      # fused gate width (= 128 for hidden_dim=32)

    def place(w_t, d):
        """Scatter gate-major (rows, 4*HD) columns of direction d into (rows, G).

        Fused gate layout: [i_f i_b | f_f f_b | g_f g_b | o_f o_b]."""
        rows = w_t.shape[0]
        out = jnp.zeros((rows, G), f32)
        for k in range(4):
            out = out.at[:, (2 * k + d) * HD:(2 * k + d + 1) * HD].set(
                w_t[:, k * HD:(k + 1) * HD])
        return out

    # layer 1 (bidirectional): torch w_ih (4h,Din), w_hh (4h,h) per direction
    wih1f = place(jnp.transpose(p["w_ih_f"]).astype(f32), 0)              # (Din, G)
    wih1b = place(jnp.transpose(p["w_ih_b"]).astype(f32), 1)              # (Din, G)
    w1 = jnp.concatenate([wih1f, wih1b], axis=1)                          # (Din, 2G)

    whh1 = jnp.concatenate(
        [place(jnp.transpose(p["w_hh_f"]).astype(f32), 0),                # rows = h_fwd dims
         place(jnp.transpose(p["w_hh_b"]).astype(f32), 1)],               # rows = h_bwd dims
        axis=0)                                                           # (H, G)
    b1 = (place((p["b_ih_f"] + p["b_hh_f"]).reshape(1, -1).astype(f32), 0)
          + place((p["b_ih_b"] + p["b_hh_b"]).reshape(1, -1).astype(f32), 1))   # (1, G)

    # layer 2 (unidirectional): input features = [fwd(HD) | bwd(HD)]
    w2t = jnp.transpose(p["w_ih_o"]).astype(f32)                          # (H, G)
    whh2 = jnp.transpose(p["w_hh_o"]).astype(f32)                         # (H, G)
    b2 = (p["b_ih_o"] + p["b_hh_o"]).reshape(1, -1).astype(f32)           # (1, G)

    # Linear_norm: row-normalize once (parameter-only transform), transpose, lane-pad
    w = p["w_lin"].astype(f32)
    wn = w / jnp.maximum(jnp.linalg.norm(w, axis=1, keepdims=True), 1e-12)
    wnt_pad = jnp.zeros((H, G), f32).at[:, :num_classes].set(jnp.transpose(wn))

    # single contiguous 128-lane weight/bias slab
    slab = jnp.concatenate([whh1, whh2, w2t, wnt_pad, b1, b2], axis=0)    # (4H+2, G)
    return dict(w1=w1, slab=slab)


# ----------------------------------- forward ----------------------------------- #

def lstm_pt_v2_forward(x, kp, *, hidden_dim, num_classes):
    """x: (B, T, input_dim) -> (out, representation) matching the PyTorch module."""
    B, T, Din = x.shape
    H = hidden_dim
    HD = H // 2
    C = num_classes
    G = 4 * H
    assert B <= _BP, "pad to a multiple of 8 and add a batch grid axis for larger batches"

    # pad batch to one full sublane tile; batch-first -> time-major, flattened
    xp = jnp.pad(x, ((0, _BP - B), (0, 0), (0, 0)))
    x2d = jnp.transpose(xp, (1, 0, 2)).reshape(T * _BP, Din)

    kernel = functools.partial(_fused_lstm_kernel, T=T, BP=_BP, H=H, HD=HD)
    slab_out = pl.pallas_call(
        kernel,
        out_shape=jax.ShapeDtypeStruct((_BP, G), jnp.float32),
        in_specs=[_VMEM, _VMEM, _VMEM],
        out_specs=_VMEM,
        scratch_shapes=[pltpu.VMEM((T * _BP, H), jnp.float32)],
    )(x2d, kp["w1"], kp["slab"])

    rep = slab_out[:B, 0:H]
    out = slab_out[:B, H:H + C]
    # .squeeze() like the PyTorch module (note: also drops batch dim if B == 1)
    return jnp.squeeze(out), rep


# --------------------------- deterministic parameters --------------------------- #

def _xavier_uniform(key, shape):
    fan_out, fan_in = shape
    bound = math.sqrt(6.0 / (fan_in + fan_out))
    return jax.random.uniform(key, shape, jnp.float32, -bound, bound)


def _orthogonal(key, shape):
    rows, cols = shape
    a = jax.random.normal(key, (rows, cols), jnp.float32)
    q, r = jnp.linalg.qr(a)
    return q * jnp.sign(jnp.diag(r))[None, :]


def _kaiming_uniform_a_sqrt5(key, shape):
    fan_in = shape[1]
    bound = 1.0 / math.sqrt(fan_in)
    return jax.random.uniform(key, shape, jnp.float32, -bound, bound)


def init_params(key, input_dim, hidden_dim, num_classes):
    h2 = hidden_dim // 2
    ks = jax.random.split(key, 8)
    return {
        # bidirectional layer (main_lstm_layer), forward direction
        "w_ih_f": _xavier_uniform(ks[0], (4 * h2, input_dim)),
        "w_hh_f": _orthogonal(ks[1], (4 * h2, h2)),
        "b_ih_f": jnp.zeros((4 * h2,), jnp.float32),
        "b_hh_f": jnp.zeros((4 * h2,), jnp.float32),
        # bidirectional layer, reverse direction
        "w_ih_b": _xavier_uniform(ks[2], (4 * h2, input_dim)),
        "w_hh_b": _orthogonal(ks[3], (4 * h2, h2)),
        "b_ih_b": jnp.zeros((4 * h2,), jnp.float32),
        "b_hh_b": jnp.zeros((4 * h2,), jnp.float32),
        # output_lstm_layer (unidirectional, hidden_dim)
        "w_ih_o": _xavier_uniform(ks[4], (4 * hidden_dim, hidden_dim)),
        "w_hh_o": _orthogonal(ks[5], (4 * hidden_dim, hidden_dim)),
        "b_ih_o": jnp.zeros((4 * hidden_dim,), jnp.float32),
        "b_hh_o": jnp.zeros((4 * hidden_dim,), jnp.float32),
        # Linear_norm weight (num_classes, hidden_dim), no bias
        "w_lin": _kaiming_uniform_a_sqrt5(ks[6], (num_classes, hidden_dim)),
    }


# ----------------------------- pure-JAX reference ----------------------------- #

def _ref_lstm(x_tm, w_ih, w_hh, b_ih, b_hh):
    T, B, _ = x_tm.shape
    H = w_hh.shape[1]

    def step(carry, x_t):
        h, c = carry
        gates = (jnp.dot(x_t, w_ih.T, precision=_HIGHEST)
                 + jnp.dot(h, w_hh.T, precision=_HIGHEST) + b_ih + b_hh)
        i = jax.nn.sigmoid(gates[:, :H])
        f = jax.nn.sigmoid(gates[:, H:2 * H])
        g = jnp.tanh(gates[:, 2 * H:3 * H])
        o = jax.nn.sigmoid(gates[:, 3 * H:])
        c = f * c + i * g
        h = o * jnp.tanh(c)
        return (h, c), h

    (_, _), hs = lax.scan(step, (jnp.zeros((B, H)), jnp.zeros((B, H))), x_tm)
    return hs


def _ref_forward(x, p):
    B, T, _ = x.shape
    xt = jnp.transpose(x, (1, 0, 2))
    hf = _ref_lstm(xt, p["w_ih_f"], p["w_hh_f"], p["b_ih_f"], p["b_hh_f"])
    hb = _ref_lstm(xt[::-1], p["w_ih_b"], p["w_hh_b"], p["b_ih_b"], p["b_hh_b"])[::-1]
    h1 = jnp.concatenate([hf, hb], axis=-1)
    h2 = _ref_lstm(h1, p["w_ih_o"], p["w_hh_o"], p["b_ih_o"], p["b_hh_o"])
    last = h2[T - 1]
    eps = 1e-12
    rep = last / jnp.maximum(jnp.linalg.norm(last, axis=1, keepdims=True), eps)
    w = p["w_lin"]
    wn = w / jnp.maximum(jnp.linalg.norm(w, axis=1, keepdims=True), eps)
    out = jax.nn.sigmoid(jnp.dot(rep, wn.T, precision=_HIGHEST))
    return jnp.squeeze(out), rep


# ------------------------------------- main ------------------------------------- #

if __name__ == "__main__":
    B, T = 2, 8
    input_dim, hidden_dim, num_classes = 16, 32, 2

    key = jax.random.PRNGKey(0)
    k_x, k_p = jax.random.split(key)
    x = jax.random.normal(k_x, (B, T, input_dim), jnp.float32)
    params = init_params(k_p, input_dim, hidden_dim, num_classes)
    kparams = prepare_kernel_params(params, input_dim, hidden_dim, num_classes)

    fwd = jax.jit(functools.partial(lstm_pt_v2_forward,
                                    hidden_dim=hidden_dim, num_classes=num_classes))
    out, rep = fwd(x, kparams)
    out = jax.block_until_ready(out)
    rep = jax.block_until_ready(rep)

    # sanity check vs pure-JAX HIGHEST-precision reference; tolerance relaxed because
    # the recurrence matmuls intentionally run at DEFAULT (single-pass bf16) precision.
    out_ref, rep_ref = _ref_forward(x, params)
    assert out.shape == (B, num_classes) and rep.shape == (B, hidden_dim)
    assert jnp.allclose(out, out_ref, atol=5e-3), "output mismatch vs reference"
    assert jnp.allclose(rep, rep_ref, atol=5e-3), "representation mismatch vs reference"

    print("KERNEL_OK")
</pallas_src>

<mosaic_0001>
module attributes {stable_mosaic.version = 11 : i64} {
  func.func @_fused_lstm_kernel(%arg0: memref<64x16xf32, #tpu.memory_space<vmem>>, %arg1: memref<16x256xf32, #tpu.memory_space<vmem>>, %arg2: memref<130x128xf32, #tpu.memory_space<vmem>>, %arg3: memref<8x128xf32, #tpu.memory_space<vmem>>, %arg4: memref<64x32xf32, #tpu.memory_space<vmem>>) attributes {dimension_semantics = [], scalar_prefetch = 0 : i64, scratch_operands = 1 : i64, tpu.core_type = #tpu.core_type<tc>} {
    %c0 = arith.constant 0 : index
    %c0_0 = arith.constant 0 : index
    %0 = vector.load %arg0[%c0, %c0_0] : memref<64x16xf32, #tpu.memory_space<vmem>>, vector<64x16xf32>
    %c0_1 = arith.constant 0 : index
    %c0_2 = arith.constant 0 : index
    %1 = vector.load %arg1[%c0_1, %c0_2] : memref<16x256xf32, #tpu.memory_space<vmem>>, vector<16x256xf32>
    %cst = arith.constant dense<0.000000e+00> : vector<64x256xf32>
    %2 = tpu.matmul %0, %1, %cst {dimension_numbers = #tpu.dot_dimension_numbers<[1], [0], [0], [1], [0, 0, 1, 1], [], []>, precision = #tpu.contract_precision<fp32>} : vector<64x16xf32>, vector<16x256xf32>, vector<64x256xf32> -> vector<64x256xf32>
    %c128 = arith.constant 128 : index
    %c0_3 = arith.constant 0 : index
    %3 = vector.load %arg2[%c128, %c0_3] : memref<130x128xf32, #tpu.memory_space<vmem>>, vector<1x128xf32>
    %4 = vector.extract_strided_slice %2 {offsets = [0, 0], sizes = [64, 128], strides = [1, 1]} : vector<64x256xf32> to vector<64x128xf32>
    %5 = vector.broadcast %3 : vector<1x128xf32> to vector<64x128xf32>
    %6 = arith.addf %4, %5 : vector<64x128xf32>
    %7 = vector.extract_strided_slice %2 {offsets = [0, 128], sizes = [64, 128], strides = [1, 1]} : vector<64x256xf32> to vector<64x128xf32>
    %c0_4 = arith.constant 0 : index
    %c0_5 = arith.constant 0 : index
    %8 = vector.load %arg2[%c0_4, %c0_5] : memref<130x128xf32, #tpu.memory_space<vmem>>, vector<32x128xf32>
    %cst_6 = arith.constant 0.000000e+00 : f32
    %9 = vector.broadcast %cst_6 : f32 to vector<8x32xf32>
    %cst_7 = arith.constant 0.000000e+00 : f32
    %10 = vector.broadcast %cst_7 : f32 to vector<8x32xf32>
    %11 = vector.extract_strided_slice %6 {offsets = [0, 0], sizes = [8, 128], strides = [1, 1]} : vector<64x128xf32> to vector<8x128xf32>
    %12 = vector.extract_strided_slice %7 {offsets = [56, 0], sizes = [8, 128], strides = [1, 1]} : vector<64x128xf32> to vector<8x128xf32>
    %13 = arith.addf %11, %12 : vector<8x128xf32>
    %cst_8 = arith.constant dense<0.000000e+00> : vector<8x128xf32>
    %14 = tpu.matmul %9, %8, %cst_8 {dimension_numbers = #tpu.dot_dimension_numbers<[1], [0], [0], [1], [0, 0, 1, 1], [], []>} : vector<8x32xf32>, vector<32x128xf32>, vector<8x128xf32> -> vector<8x128xf32>
    %15 = arith.addf %13, %14 : vector<8x128xf32>
    %16 = arith.negf %15 : vector<8x128xf32>
    %17 = math.exp %16 : vector<8x128xf32>
    %cst_9 = arith.constant 1.000000e+00 : f32
    %18 = vector.broadcast %cst_9 : f32 to vector<8x128xf32>
    %19 = arith.addf %18, %17 : vector<8x128xf32>
    %20 = arith.divf %18, %19 : vector<8x128xf32>
    %21 = vector.extract_strided_slice %20 {offsets = [0, 0], sizes = [8, 32], strides = [1, 1]} : vector<8x128xf32> to vector<8x32xf32>
    %22 = vector.extract_strided_slice %20 {offsets = [0, 32], sizes = [8, 32], strides = [1, 1]} : vector<8x128xf32> to vector<8x32xf32>
    %23 = vector.extract_strided_slice %20 {offsets = [0, 96], sizes = [8, 32], strides = [1, 1]} : vector<8x128xf32> to vector<8x32xf32>
    %24 = vector.extract_strided_slice %15 {offsets = [0, 64], sizes = [8, 32], strides = [1, 1]} : vector<8x128xf32> to vector<8x32xf32>
    %25 = math.tanh %24 : vector<8x32xf32>
    %26 = arith.mulf %22, %10 : vector<8x32xf32>
    %27 = arith.mulf %21, %25 : vector<8x32xf32>
    %28 = arith.addf %26, %27 : vector<8x32xf32>
    %29 = math.tanh %28 : vector<8x32xf32>
    %30 = arith.mulf %23, %29 : vector<8x32xf32>
    %31 = vector.extract_strided_slice %30 {offsets = [0, 0], sizes = [8, 16], strides = [1, 1]} : vector<8x32xf32> to vector<8x16xf32>
    %c0_10 = arith.constant 0 : index
    %c0_11 = arith.constant 0 : index
    %32 = vector.load %arg4[%c0_10, %c0_11] : memref<64x32xf32, #tpu.memory_space<vmem>>, vector<8x16xf32>
    tpu.vector_store %arg4[%c0_10, %c0_11], %31 {strides = array<i32>} : memref<64x32xf32, #tpu.memory_space<vmem>>, vector<8x16xf32>,
    %33 = vector.extract_strided_slice %30 {offsets = [0, 16], sizes = [8, 16], strides = [1, 1]} : vector<8x32xf32> to vector<8x16xf32>
    %c56 = arith.constant 56 : index
    %c16 = arith.constant 16 : index
    %34 = vector.load %arg4[%c56, %c16] : memref<64x32xf32, #tpu.memory_space<vmem>>, vector<8x16xf32>
    tpu.vector_store %arg4[%c56, %c16], %33 {strides = array<i32>} : memref<64x32xf32, #tpu.memory_space<vmem>>, vector<8x16xf32>,
    %35 = vector.extract_strided_slice %6 {offsets = [8, 0], sizes = [8, 128], strides = [1, 1]} : vector<64x128xf32> to vector<8x128xf32>
    %36 = vector.extract_strided_slice %7 {offsets = [48, 0], sizes = [8, 128], strides = [1, 1]} : vector<64x128xf32> to vector<8x128xf32>
    %37 = arith.addf %35, %36 : vector<8x128xf32>
    %cst_12 = arith.constant dense<0.000000e+00> : vector<8x128xf32>
    %38 = tpu.matmul %30, %8, %cst_12 {dimension_numbers = #tpu.dot_dimension_numbers<[1], [0], [0], [1], [0, 0, 1, 1], [], []>} : vector<8x32xf32>, vector<32x128xf32>, vector<8x128xf32> -> vector<8x128xf32>
    %39 = arith.addf %37, %38 : vector<8x128xf32>
    %40 = arith.negf %39 : vector<8x128xf32>
    %41 = math.exp %40 : vector<8x128xf32>
    %cst_13 = arith.constant 1.000000e+00 : f32
    %42 = vector.broadcast %cst_13 : f32 to vector<8x128xf32>
    %43 = arith.addf %42, %41 : vector<8x128xf32>
    %44 = arith.divf %42, %43 : vector<8x128xf32>
    %45 = vector.extract_strided_slice %44 {offsets = [0, 0], sizes = [8, 32], strides = [1, 1]} : vector<8x128xf32> to vector<8x32xf32>
    %46 = vector.extract_strided_slice %44 {offsets = [0, 32], sizes = [8, 32], strides = [1, 1]} : vector<8x128xf32> to vector<8x32xf32>
    %47 = vector.extract_strided_slice %44 {offsets = [0, 96], sizes = [8, 32], strides = [1, 1]} : vector<8x128xf32> to vector<8x32xf32>
    %48 = vector.extract_strided_slice %39 {offsets = [0, 64], sizes = [8, 32], strides = [1, 1]} : vector<8x128xf32> to vector<8x32xf32>
    %49 = math.tanh %48 : vector<8x32xf32>
    %50 = arith.mulf %46, %28 : vector<8x32xf32>
    %51 = arith.mulf %45, %49 : vector<8x32xf32>
    %52 = arith.addf %50, %51 : vector<8x32xf32>
    %53 = math.tanh %52 : vector<8x32xf32>
    %54 = arith.mulf %47, %53 : vector<8x32xf32>
    %55 = vector.extract_strided_slice %54 {offsets = [0, 0], sizes = [8, 16], strides = [1, 1]} : vector<8x32xf32> to vector<8x16xf32>
    %c8 = arith.constant 8 : index
    %c0_14 = arith.constant 0 : index
    %56 = vector.load %arg4[%c8, %c0_14] : memref<64x32xf32, #tpu.memory_space<vmem>>, vector<8x16xf32>
    tpu.vector_store %arg4[%c8, %c0_14], %55 {strides = array<i32>} : memref<64x32xf32, #tpu.memory_space<vmem>>, vector<8x16xf32>,
    %57 = vector.extract_strided_slice %54 {offsets = [0, 16], sizes = [8, 16], strides = [1, 1]} : vector<8x32xf32> to vector<8x16xf32>
    %c48 = arith.constant 48 : index
    %c16_15 = arith.constant 16 : index
    %58 = vector.load %arg4[%c48, %c16_15] : memref<64x32xf32, #tpu.memory_space<vmem>>, vector<8x16xf32>
    tpu.vector_store %arg4[%c48, %c16_15], %57 {strides = array<i32>} : memref<64x32xf32, #tpu.memory_space<vmem>>, vector<8x16xf32>,
    %59 = vector.extract_strided_slice %6 {offsets = [16, 0], sizes = [8, 128], strides = [1, 1]} : vector<64x128xf32> to vector<8x128xf32>
    %60 = vector.extract_strided_slice %7 {offsets = [40, 0], sizes = [8, 128], strides = [1, 1]} : vector<64x128xf32> to vector<8x128xf32>
    %61 = arith.addf %59, %60 : vector<8x128xf32>
    %cst_16 = arith.constant dense<0.000000e+00> : vector<8x128xf32>
    %62 = tpu.matmul %54, %8, %cst_16 {dimension_numbers = #tpu.dot_dimension_numbers<[1], [0], [0], [1], [0, 0, 1, 1], [], []>} : vector<8x32xf32>, vector<32x128xf32>, vector<8x128xf32> -> vector<8x128xf32>
    %63 = arith.addf %61, %62 : vector<8x128xf32>
    %64 = arith.negf %63 : vector<8x128xf32>
    %65 = math.exp %64 : vector<8x128xf32>
    %cst_17 = arith.constant 1.000000e+00 : f32
    %66 = vector.broadcast %cst_17 : f32 to vector<8x128xf32>
    %67 = arith.addf %66, %65 : vector<8x128xf32>
    %68 = arith.divf %66, %67 : vector<8x128xf32>
    %69 = vector.extract_strided_slice %68 {offsets = [0, 0], sizes = [8, 32], strides = [1, 1]} : vector<8x128xf32> to vector<8x32xf32>
    %70 = vector.extract_strided_slice %68 {offsets = [0, 32], sizes = [8, 32], strides = [1, 1]} : vector<8x128xf32> to vector<8x32xf32>
    %71 = vector.extract_strided_slice %68 {offsets = [0, 96], sizes = [8, 32], strides = [1, 1]} : vector<8x128xf32> to vector<8x32xf32>
    %72 = vector.extract_strided_slice %63 {offsets = [0, 64], sizes = [8, 32], strides = [1, 1]} : vector<8x128xf32> to vector<8x32xf32>
    %73 = math.tanh %72 : vector<8x32xf32>
    %74 = arith.mulf %70, %52 : vector<8x32xf32>
    %75 = arith.mulf %69, %73 : vector<8x32xf32>
    %76 = arith.addf %74, %75 : vector<8x32xf32>
    %77 = math.tanh %76 : vector<8x32xf32>
    %78 = arith.mulf %71, %77 : vector<8x32xf32>
    %79 = vector.extract_strided_slice %78 {offsets = [0, 0], sizes = [8, 16], strides = [1, 1]} : vector<8x32xf32> to vector<8x16xf32>
    %c16_18 = arith.constant 16 : index
    %c0_19 = arith.constant 0 : index
    %80 = vector.load %arg4[%c16_18, %c0_19] : memref<64x32xf32, #tpu.memory_space<vmem>>, vector<8x16xf32>
    tpu.vector_store %arg4[%c16_18, %c0_19], %79 {strides = array<i32>} : memref<64x32xf32, #tpu.memory_space<vmem>>, vector<8x16xf32>,
    %81 = vector.extract_strided_slice %78 {offsets = [0, 16], sizes = [8, 16], strides = [1, 1]} : vector<8x32xf32> to vector<8x16xf32>
    %c40 = arith.constant 40 : index
    %c16_20 = arith.constant 16 : index
    %82 = vector.load %arg4[%c40, %c16_20] : memref<64x32xf32, #tpu.memory_space<vmem>>, vector<8x16xf32>
    tpu.vector_store %arg4[%c40, %c16_20], %81 {strides = array<i32>} : memref<64x32xf32, #tpu.memory_space<vmem>>, vector<8x16xf32>,
    %83 = vector.extract_strided_slice %6 {offsets = [24, 0], sizes = [8, 128], strides = [1, 1]} : vector<64x128xf32> to vector<8x128xf32>
    %84 = vector.extract_strided_slice %7 {offsets = [32, 0], sizes = [8, 128], strides = [1, 1]} : vector<64x128xf32> to vector<8x128xf32>
    %85 = arith.addf %83, %84 : vector<8x128xf32>
    %cst_21 = arith.constant dense<0.000000e+00> : vector<8x128xf32>
    %86 = tpu.matmul %78, %8, %cst_21 {dimension_numbers = #tpu.dot_dimension_numbers<[1], [0], [0], [1], [0, 0, 1, 1], [], []>} : vector<8x32xf32>, vector<32x128xf32>, vector<8x128xf32> -> vector<8x128xf32>
    %87 = arith.addf %85, %86 : vector<8x128xf32>
    %88 = arith.negf %87 : vector<8x128xf32>
    %89 = math.exp %88 : vector<8x128xf32>
    %cst_22 = arith.constant 1.000000e+00 : f32
    %90 = vector.broadcast %cst_22 : f32 to vector<8x128xf32>
    %91 = arith.addf %90, %89 : vector<8x128xf32>
    %92 = arith.divf %90, %91 : vector<8x128xf32>
    %93 = vector.extract_strided_slice %92 {offsets = [0, 0], sizes = [8, 32], strides = [1, 1]} : vector<8x128xf32> to vector<8x32xf32>
    %94 = vector.extract_strided_slice %92 {offsets = [0, 32], sizes = [8, 32], strides = [1, 1]} : vector<8x128xf32> to vector<8x32xf32>
    %95 = vector.extract_strided_slice %92 {offsets = [0, 96], sizes = [8, 32], strides = [1, 1]} : vector<8x128xf32> to vector<8x32xf32>
    %96 = vector.extract_strided_slice %87 {offsets = [0, 64], sizes = [8, 32], strides = [1, 1]} : vector<8x128xf32> to vector<8x32xf32>
    %97 = math.tanh %96 : vector<8x32xf32>
    %98 = arith.mulf %94, %76 : vector<8x32xf32>
    %99 = arith.mulf %93, %97 : vector<8x32xf32>
    %100 = arith.addf %98, %99 : vector<8x32xf32>
    %101 = math.tanh %100 : vector<8x32xf32>
    %102 = arith.mulf %95, %101 : vector<8x32xf32>
    %103 = vector.extract_strided_slice %102 {offsets = [0, 0], sizes = [8, 16], strides = [1, 1]} : vector<8x32xf32> to vector<8x16xf32>
    %c24 = arith.constant 24 : index
    %c0_23 = arith.constant 0 : index
    %104 = vector.load %arg4[%c24, %c0_23] : memref<64x32xf32, #tpu.memory_space<vmem>>, vector<8x16xf32>
    tpu.vector_store %arg4[%c24, %c0_23], %103 {strides = array<i32>} : memref<64x32xf32, #tpu.memory_space<vmem>>, vector<8x16xf32>,
    %105 = vector.extract_strided_slice %102 {offsets = [0, 16], sizes = [8, 16], strides = [1, 1]} : vector<8x32xf32> to vector<8x16xf32>
    %c32 = arith.constant 32 : index
    %c16_24 = arith.constant 16 : index
    %106 = vector.load %arg4[%c32, %c16_24] : memref<64x32xf32, #tpu.memory_space<vmem>>, vector<8x16xf32>
    tpu.vector_store %arg4[%c32, %c16_24], %105 {strides = array<i32>} : memref<64x32xf32, #tpu.memory_space<vmem>>, vector<8x16xf32>,
    %107 = vector.extract_strided_slice %6 {offsets = [32, 0], sizes = [8, 128], strides = [1, 1]} : vector<64x128xf32> to vector<8x128xf32>
    %108 = vector.extract_strided_slice %7 {offsets = [24, 0], sizes = [8, 128], strides = [1, 1]} : vector<64x128xf32> to vector<8x128xf32>
    %109 = arith.addf %107, %108 : vector<8x128xf32>
    %cst_25 = arith.constant dense<0.000000e+00> : vector<8x128xf32>
    %110 = tpu.matmul %102, %8, %cst_25 {dimension_numbers = #tpu.dot_dimension_numbers<[1], [0], [0], [1], [0, 0, 1, 1], [], []>} : vector<8x32xf32>, vector<32x128xf32>, vector<8x128xf32> -> vector<8x128xf32>
    %111 = arith.addf %109, %110 : vector<8x128xf32>
    %112 = arith.negf %111 : vector<8x128xf32>
    %113 = math.exp %112 : vector<8x128xf32>
    %cst_26 = arith.constant 1.000000e+00 : f32
    %114 = vector.broadcast %cst_26 : f32 to vector<8x128xf32>
    %115 = arith.addf %114, %113 : vector<8x128xf32>
    %116 = arith.divf %114, %115 : vector<8x128xf32>
    %117 = vector.extract_strided_slice %116 {offsets = [0, 0], sizes = [8, 32], strides = [1, 1]} : vector<8x128xf32> to vector<8x32xf32>
    %118 = vector.extract_strided_slice %116 {offsets = [0, 32], sizes = [8, 32], strides = [1, 1]} : vector<8x128xf32> to vector<8x32xf32>
    %119 = vector.extract_strided_slice %116 {offsets = [0, 96], sizes = [8, 32], strides = [1, 1]} : vector<8x128xf32> to vector<8x32xf32>
    %120 = vector.extract_strided_slice %111 {offsets = [0, 64], sizes = [8, 32], strides = [1, 1]} : vector<8x128xf32> to vector<8x32xf32>
    %121 = math.tanh %120 : vector<8x32xf32>
    %122 = arith.mulf %118, %100 : vector<8x32xf32>
    %123 = arith.mulf %117, %121 : vector<8x32xf32>
    %124 = arith.addf %122, %123 : vector<8x32xf32>
    %125 = math.tanh %124 : vector<8x32xf32>
    %126 = arith.mulf %119, %125 : vector<8x32xf32>
    %127 = vector.extract_strided_slice %126 {offsets = [0, 0], sizes = [8, 16], strides = [1, 1]} : vector<8x32xf32> to vector<8x16xf32>
    %c32_27 = arith.constant 32 : index
    %c0_28 = arith.constant 0 : index
    %128 = vector.load %arg4[%c32_27, %c0_28] : memref<64x32xf32, #tpu.memory_space<vmem>>, vector<8x16xf32>
    tpu.vector_store %arg4[%c32_27, %c0_28], %127 {strides = array<i32>} : memref<64x32xf32, #tpu.memory_space<vmem>>, vector<8x16xf32>,
    %129 = vector.extract_strided_slice %126 {offsets = [0, 16], sizes = [8, 16], strides = [1, 1]} : vector<8x32xf32> to vector<8x16xf32>
    %c24_29 = arith.constant 24 : index
    %c16_30 = arith.constant 16 : index
    %130 = vector.load %arg4[%c24_29, %c16_30] : memref<64x32xf32, #tpu.memory_space<vmem>>, vector<8x16xf32>
    tpu.vector_store %arg4[%c24_29, %c16_30], %129 {strides = array<i32>} : memref<64x32xf32, #tpu.memory_space<vmem>>, vector<8x16xf32>,
    %131 = vector.extract_strided_slice %6 {offsets = [40, 0], sizes = [8, 128], strides = [1, 1]} : vector<64x128xf32> to vector<8x128xf32>
    %132 = vector.extract_strided_slice %7 {offsets = [16, 0], sizes = [8, 128], strides = [1, 1]} : vector<64x128xf32> to vector<8x128xf32>
    %133 = arith.addf %131, %132 : vector<8x128xf32>
    %cst_31 = arith.constant dense<0.000000e+00> : vector<8x128xf32>
    %134 = tpu.matmul %126, %8, %cst_31 {dimension_numbers = #tpu.dot_dimension_numbers<[1], [0], [0], [1], [0, 0, 1, 1], [], []>} : vector<8x32xf32>, vector<32x128xf32>, vector<8x128xf32> -> vector<8x128xf32>
    %135 = arith.addf %133, %134 : vector<8x128xf32>
    %136 = arith.negf %135 : vector<8x128xf32>
    %137 = math.exp %136 : vector<8x128xf32>
    %cst_32 = arith.constant 1.000000e+00 : f32
    %138 = vector.broadcast %cst_32 : f32 to vector<8x128xf32>
    %139 = arith.addf %138, %137 : vector<8x128xf32>
    %140 = arith.divf %138, %139 : vector<8x128xf32>
    %141 = vector.extract_strided_slice %140 {offsets = [0, 0], sizes = [8, 32], strides = [1, 1]} : vector<8x128xf32> to vector<8x32xf32>
    %142 = vector.extract_strided_slice %140 {offsets = [0, 32], sizes = [8, 32], strides = [1, 1]} : vector<8x128xf32> to vector<8x32xf32>
    %143 = vector.extract_strided_slice %140 {offsets = [0, 96], sizes = [8, 32], strides = [1, 1]} : vector<8x128xf32> to vector<8x32xf32>
    %144 = vector.extract_strided_slice %135 {offsets = [0, 64], sizes = [8, 32], strides = [1, 1]} : vector<8x128xf32> to vector<8x32xf32>
    %145 = math.tanh %144 : vector<8x32xf32>
    %146 = arith.mulf %142, %124 : vector<8x32xf32>
    %147 = arith.mulf %141, %145 : vector<8x32xf32>
    %148 = arith.addf %146, %147 : vector<8x32xf32>
    %149 = math.tanh %148 : vector<8x32xf32>
    %150 = arith.mulf %143, %149 : vector<8x32xf32>
    %151 = vector.extract_strided_slice %150 {offsets = [0, 0], sizes = [8, 16], strides = [1, 1]} : vector<8x32xf32> to vector<8x16xf32>
    %c40_33 = arith.constant 40 : index
    %c0_34 = arith.constant 0 : index
    %152 = vector.load %arg4[%c40_33, %c0_34] : memref<64x32xf32, #tpu.memory_space<vmem>>, vector<8x16xf32>
    tpu.vector_store %arg4[%c40_33, %c0_34], %151 {strides = array<i32>} : memref<64x32xf32, #tpu.memory_space<vmem>>, vector<8x16xf32>,
    %153 = vector.extract_strided_slice %150 {offsets = [0, 16], sizes = [8, 16], strides = [1, 1]} : vector<8x32xf32> to vector<8x16xf32>
    %c16_35 = arith.constant 16 : index
    %c16_36 = arith.constant 16 : index
    %154 = vector.load %arg4[%c16_35, %c16_36] : memref<64x32xf32, #tpu.memory_space<vmem>>, vector<8x16xf32>
    tpu.vector_store %arg4[%c16_35, %c16_36], %153 {strides = array<i32>} : memref<64x32xf32, #tpu.memory_space<vmem>>, vector<8x16xf32>,
    %155 = vector.extract_strided_slice %6 {offsets = [48, 0], sizes = [8, 128], strides = [1, 1]} : vector<64x128xf32> to vector<8x128xf32>
    %156 = vector.extract_strided_slice %7 {offsets = [8, 0], sizes = [8, 128], strides = [1, 1]} : vector<64x128xf32> to vector<8x128xf32>
    %157 = arith.addf %155, %156 : vector<8x128xf32>
    %cst_37 = arith.constant dense<0.000000e+00> : vector<8x128xf32>
    %158 = tpu.matmul %150, %8, %cst_37 {dimension_numbers = #tpu.dot_dimension_numbers<[1], [0], [0], [1], [0, 0, 1, 1], [], []>} : vector<8x32xf32>, vector<32x128xf32>, vector<8x128xf32> -> vector<8x128xf32>
    %159 = arith.addf %157, %158 : vector<8x128xf32>
    %160 = arith.negf %159 : vector<8x128xf32>
    %161 = math.exp %160 : vector<8x128xf32>
    %cst_38 = arith.constant 1.000000e+00 : f32
    %162 = vector.broadcast %cst_38 : f32 to vector<8x128xf32>
    %163 = arith.addf %162, %161 : vector<8x128xf32>
    %164 = arith.divf %162, %163 : vector<8x128xf32>
    %165 = vector.extract_strided_slice %164 {offsets = [0, 0], sizes = [8, 32], strides = [1, 1]} : vector<8x128xf32> to vector<8x32xf32>
    %166 = vector.extract_strided_slice %164 {offsets = [0, 32], sizes = [8, 32], strides = [1, 1]} : vector<8x128xf32> to vector<8x32xf32>
    %167 = vector.extract_strided_slice %164 {offsets = [0, 96], sizes = [8, 32], strides = [1, 1]} : vector<8x128xf32> to vector<8x32xf32>
    %168 = vector.extract_strided_slice %159 {offsets = [0, 64], sizes = [8, 32], strides = [1, 1]} : vector<8x128xf32> to vector<8x32xf32>
    %169 = math.tanh %168 : vector<8x32xf32>
    %170 = arith.mulf %166, %148 : vector<8x32xf32>
    %171 = arith.mulf %165, %169 : vector<8x32xf32>
    %172 = arith.addf %170, %171 : vector<8x32xf32>
    %173 = math.tanh %172 : vector<8x32xf32>
    %174 = arith.mulf %167, %173 : vector<8x32xf32>
    %175 = vector.extract_strided_slice %174 {offsets = [0, 0], sizes = [8, 16], strides = [1, 1]} : vector<8x32xf32> to vector<8x16xf32>
    %c48_39 = arith.constant 48 : index
    %c0_40 = arith.constant 0 : index
    %176 = vector.load %arg4[%c48_39, %c0_40] : memref<64x32xf32, #tpu.memory_space<vmem>>, vector<8x16xf32>
    tpu.vector_store %arg4[%c48_39, %c0_40], %175 {strides = array<i32>} : memref<64x32xf32, #tpu.memory_space<vmem>>, vector<8x16xf32>,
    %177 = vector.extract_strided_slice %174 {offsets = [0, 16], sizes = [8, 16], strides = [1, 1]} : vector<8x32xf32> to vector<8x16xf32>
    %c8_41 = arith.constant 8 : index
    %c16_42 = arith.constant 16 : index
    %178 = vector.load %arg4[%c8_41, %c16_42] : memref<64x32xf32, #tpu.memory_space<vmem>>, vector<8x16xf32>
    tpu.vector_store %arg4[%c8_41, %c16_42], %177 {strides = array<i32>} : memref<64x32xf32, #tpu.memory_space<vmem>>, vector<8x16xf32>,
    %179 = vector.extract_strided_slice %6 {offsets = [56, 0], sizes = [8, 128], strides = [1, 1]} : vector<64x128xf32> to vector<8x128xf32>
    %180 = vector.extract_strided_slice %7 {offsets = [0, 0], sizes = [8, 128], strides = [1, 1]} : vector<64x128xf32> to vector<8x128xf32>
    %181 = arith.addf %179, %180 : vector<8x128xf32>
    %cst_43 = arith.constant dense<0.000000e+00> : vector<8x128xf32>
    %182 = tpu.matmul %174, %8, %cst_43 {dimension_numbers = #tpu.dot_dimension_numbers<[1], [0], [0], [1], [0, 0, 1, 1], [], []>} : vector<8x32xf32>, vector<32x128xf32>, vector<8x128xf32> -> vector<8x128xf32>
    %183 = arith.addf %181, %182 : vector<8x128xf32>
    %184 = arith.negf %183 : vector<8x128xf32>
    %185 = math.exp %184 : vector<8x128xf32>
    %cst_44 = arith.constant 1.000000e+00 : f32
    %186 = vector.broadcast %cst_44 : f32 to vector<8x128xf32>
    %187 = arith.addf %186, %185 : vector<8x128xf32>
    %188 = arith.divf %186, %187 : vector<8x128xf32>
    %189 = vector.extract_strided_slice %188 {offsets = [0, 0], sizes = [8, 32], strides = [1, 1]} : vector<8x128xf32> to vector<8x32xf32>
    %190 = vector.extract_strided_slice %188 {offsets = [0, 32], sizes = [8, 32], strides = [1, 1]} : vector<8x128xf32> to vector<8x32xf32>
    %191 = vector.extract_strided_slice %188 {offsets = [0, 96], sizes = [8, 32], strides = [1, 1]} : vector<8x128xf32> to vector<8x32xf32>
    %192 = vector.extract_strided_slice %183 {offsets = [0, 64], sizes = [8, 32], strides = [1, 1]} : vector<8x128xf32> to vector<8x32xf32>
    %193 = math.tanh %192 : vector<8x32xf32>
    %194 = arith.mulf %190, %172 : vector<8x32xf32>
    %195 = arith.mulf %189, %193 : vector<8x32xf32>
    %196 = arith.addf %194, %195 : vector<8x32xf32>
    %197 = math.tanh %196 : vector<8x32xf32>
    %198 = arith.mulf %191, %197 : vector<8x32xf32>
    %199 = vector.extract_strided_slice %198 {offsets = [0, 0], sizes = [8, 16], strides = [1, 1]} : vector<8x32xf32> to vector<8x16xf32>
    %c56_45 = arith.constant 56 : index
    %c0_46 = arith.constant 0 : index
    %200 = vector.load %arg4[%c56_45, %c0_46] : memref<64x32xf32, #tpu.memory_space<vmem>>, vector<8x16xf32>
    tpu.vector_store %arg4[%c56_45, %c0_46], %199 {strides = array<i32>} : memref<64x32xf32, #tpu.memory_space<vmem>>, vector<8x16xf32>,
    %201 = vector.extract_strided_slice %198 {offsets = [0, 16], sizes = [8, 16], strides = [1, 1]} : vector<8x32xf32> to vector<8x16xf32>
    %c0_47 = arith.constant 0 : index
    %c16_48 = arith.constant 16 : index
    %202 = vector.load %arg4[%c0_47, %c16_48] : memref<64x32xf32, #tpu.memory_space<vmem>>, vector<8x16xf32>
    tpu.vector_store %arg4[%c0_47, %c16_48], %201 {strides = array<i32>} : memref<64x32xf32, #tpu.memory_space<vmem>>, vector<8x16xf32>,
    %c64 = arith.constant 64 : index
    %c0_49 = arith.constant 0 : index
    %203 = vector.load %arg2[%c64, %c0_49] : memref<130x128xf32, #tpu.memory_space<vmem>>, vector<32x128xf32>
    %c129 = arith.constant 129 : index
    %c0_50 = arith.constant 0 : index
    %204 = vector.load %arg2[%c129, %c0_50] : memref<130x128xf32, #tpu.memory_space<vmem>>, vector<1x128xf32>
    %c0_51 = arith.constant 0 : index
    %c0_52 = arith.constant 0 : index
    %205 = vector.load %arg4[%c0_51, %c0_52] : memref<64x32xf32, #tpu.memory_space<vmem>>, vector<64x32xf32>
    %cst_53 = arith.constant dense<0.000000e+00> : vector<64x128xf32>
    %206 = tpu.matmul %205, %203, %cst_53 {dimension_numbers = #tpu.dot_dimension_numbers<[1], [0], [0], [1], [0, 0, 1, 1], [], []>, precision = #tpu.contract_precision<fp32>} : vector<64x32xf32>, vector<32x128xf32>, vector<64x128xf32> -> vector<64x128xf32>
    %207 = vector.broadcast %204 : vector<1x128xf32> to vector<64x128xf32>
    %208 = arith.addf %206, %207 : vector<64x128xf32>
    %c32_54 = arith.constant 32 : index
    %c0_55 = arith.constant 0 : index
    %209 = vector.load %arg2[%c32_54, %c0_55] : memref<130x128xf32, #tpu.memory_space<vmem>>, vector<32x128xf32>
    %cst_56 = arith.constant 0.000000e+00 : f32
    %210 = vector.broadcast %cst_56 : f32 to vector<8x32xf32>
    %cst_57 = arith.constant 0.000000e+00 : f32
    %211 = vector.broadcast %cst_57 : f32 to vector<8x32xf32>
    %212 = vector.extract_strided_slice %208 {offsets = [0, 0], sizes = [8, 128], strides = [1, 1]} : vector<64x128xf32> to vector<8x128xf32>
    %cst_58 = arith.constant dense<0.000000e+00> : vector<8x128xf32>
    %213 = tpu.matmul %210, %209, %cst_58 {dimension_numbers = #tpu.dot_dimension_numbers<[1], [0], [0], [1], [0, 0, 1, 1], [], []>} : vector<8x32xf32>, vector<32x128xf32>, vector<8x128xf32> -> vector<8x128xf32>
    %214 = arith.addf %212, %213 : vector<8x128xf32>
    %215 = arith.negf %214 : vector<8x128xf32>
    %216 = math.exp %215 : vector<8x128xf32>
    %cst_59 = arith.constant 1.000000e+00 : f32
    %217 = vector.broadcast %cst_59 : f32 to vector<8x128xf32>
    %218 = arith.addf %217, %216 : vector<8x128xf32>
    %219 = arith.divf %217, %218 : vector<8x128xf32>
    %220 = vector.extract_strided_slice %219 {offsets = [0, 0], sizes = [8, 32], strides = [1, 1]} : vector<8x128xf32> to vector<8x32xf32>
    %221 = vector.extract_strided_slice %219 {offsets = [0, 32], sizes = [8, 32], strides = [1, 1]} : vector<8x128xf32> to vector<8x32xf32>
    %222 = vector.extract_strided_slice %219 {offsets = [0, 96], sizes = [8, 32], strides = [1, 1]} : vector<8x128xf32> to vector<8x32xf32>
    %223 = vector.extract_strided_slice %214 {offsets = [0, 64], sizes = [8, 32], strides = [1, 1]} : vector<8x128xf32> to vector<8x32xf32>
    %224 = math.tanh %223 : vector<8x32xf32>
    %225 = arith.mulf %221, %211 : vector<8x32xf32>
    %226 = arith.mulf %220, %224 : vector<8x32xf32>
    %227 = arith.addf %225, %226 : vector<8x32xf32>
    %228 = math.tanh %227 : vector<8x32xf32>
    %229 = arith.mulf %222, %228 : vector<8x32xf32>
    %230 = vector.extract_strided_slice %208 {offsets = [8, 0], sizes = [8, 128], strides = [1, 1]} : vector<64x128xf32> to vector<8x128xf32>
    %cst_60 = arith.constant dense<0.000000e+00> : vector<8x128xf32>
    %231 = tpu.matmul %229, %209, %cst_60 {dimension_numbers = #tpu.dot_dimension_numbers<[1], [0], [0], [1], [0, 0, 1, 1], [], []>} : vector<8x32xf32>, vector<32x128xf32>, vector<8x128xf32> -> vector<8x128xf32>
    %232 = arith.addf %230, %231 : vector<8x128xf32>
    %233 = arith.negf %232 : vector<8x128xf32>
    %234 = math.exp %233 : vector<8x128xf32>
    %cst_61 = arith.constant 1.000000e+00 : f32
    %235 = vector.broadcast %cst_61 : f32 to vector<8x128xf32>
    %236 = arith.addf %235, %234 : vector<8x128xf32>
    %237 = arith.divf %235, %236 : vector<8x128xf32>
    %238 = vector.extract_strided_slice %237 {offsets = [0, 0], sizes = [8, 32], strides = [1, 1]} : vector<8x128xf32> to vector<8x32xf32>
    %239 = vector.extract_strided_slice %237 {offsets = [0, 32], sizes = [8, 32], strides = [1, 1]} : vector<8x128xf32> to vector<8x32xf32>
    %240 = vector.extract_strided_slice %237 {offsets = [0, 96], sizes = [8, 32], strides = [1, 1]} : vector<8x128xf32> to vector<8x32xf32>
    %241 = vector.extract_strided_slice %232 {offsets = [0, 64], sizes = [8, 32], strides = [1, 1]} : vector<8x128xf32> to vector<8x32xf32>
    %242 = math.tanh %241 : vector<8x32xf32>
    %243 = arith.mulf %239, %227 : vector<8x32xf32>
    %244 = arith.mulf %238, %242 : vector<8x32xf32>
    %245 = arith.addf %243, %244 : vector<8x32xf32>
    %246 = math.tanh %245 : vector<8x32xf32>
    %247 = arith.mulf %240, %246 : vector<8x32xf32>
    %248 = vector.extract_strided_slice %208 {offsets = [16, 0], sizes = [8, 128], strides = [1, 1]} : vector<64x128xf32> to vector<8x128xf32>
    %cst_62 = arith.constant dense<0.000000e+00> : vector<8x128xf32>
    %249 = tpu.matmul %247, %209, %cst_62 {dimension_numbers = #tpu.dot_dimension_numbers<[1], [0], [0], [1], [0, 0, 1, 1], [], []>} : vector<8x32xf32>, vector<32x128xf32>, vector<8x128xf32> -> vector<8x128xf32>
    %250 = arith.addf %248, %249 : vector<8x128xf32>
    %251 = arith.negf %250 : vector<8x128xf32>
    %252 = math.exp %251 : vector<8x128xf32>
    %cst_63 = arith.constant 1.000000e+00 : f32
    %253 = vector.broadcast %cst_63 : f32 to vector<8x128xf32>
    %254 = arith.addf %253, %252 : vector<8x128xf32>
    %255 = arith.divf %253, %254 : vector<8x128xf32>
    %256 = vector.extract_strided_slice %255 {offsets = [0, 0], sizes = [8, 32], strides = [1, 1]} : vector<8x128xf32> to vector<8x32xf32>
    %257 = vector.extract_strided_slice %255 {offsets = [0, 32], sizes = [8, 32], strides = [1, 1]} : vector<8x128xf32> to vector<8x32xf32>
    %258 = vector.extract_strided_slice %255 {offsets = [0, 96], sizes = [8, 32], strides = [1, 1]} : vector<8x128xf32> to vector<8x32xf32>
    %259 = vector.extract_strided_slice %250 {offsets = [0, 64], sizes = [8, 32], strides = [1, 1]} : vector<8x128xf32> to vector<8x32xf32>
    %260 = math.tanh %259 : vector<8x32xf32>
    %261 = arith.mulf %257, %245 : vector<8x32xf32>
    %262 = arith.mulf %256, %260 : vector<8x32xf32>
    %263 = arith.addf %261, %262 : vector<8x32xf32>
    %264 = math.tanh %263 : vector<8x32xf32>
    %265 = arith.mulf %258, %264 : vector<8x32xf32>
    %266 = vector.extract_strided_slice %208 {offsets = [24, 0], sizes = [8, 128], strides = [1, 1]} : vector<64x128xf32> to vector<8x128xf32>
    %cst_64 = arith.constant dense<0.000000e+00> : vector<8x128xf32>
    %267 = tpu.matmul %265, %209, %cst_64 {dimension_numbers = #tpu.dot_dimension_numbers<[1], [0], [0], [1], [0, 0, 1, 1], [], []>} : vector<8x32xf32>, vector<32x128xf32>, vector<8x128xf32> -> vector<8x128xf32>
    %268 = arith.addf %266, %267 : vector<8x128xf32>
    %269 = arith.negf %268 : vector<8x128xf32>
    %270 = math.exp %269 : vector<8x128xf32>
    %cst_65 = arith.constant 1.000000e+00 : f32
    %271 = vector.broadcast %cst_65 : f32 to vector<8x128xf32>
    %272 = arith.addf %271, %270 : vector<8x128xf32>
    %273 = arith.divf %271, %272 : vector<8x128xf32>
    %274 = vector.extract_strided_slice %273 {offsets = [0, 0], sizes = [8, 32], strides = [1, 1]} : vector<8x128xf32> to vector<8x32xf32>
    %275 = vector.extract_strided_slice %273 {offsets = [0, 32], sizes = [8, 32], strides = [1, 1]} : vector<8x128xf32> to vector<8x32xf32>
    %276 = vector.extract_strided_slice %273 {offsets = [0, 96], sizes = [8, 32], strides = [1, 1]} : vector<8x128xf32> to vector<8x32xf32>
    %277 = vector.extract_strided_slice %268 {offsets = [0, 64], sizes = [8, 32], strides = [1, 1]} : vector<8x128xf32> to vector<8x32xf32>
    %278 = math.tanh %277 : vector<8x32xf32>
    %279 = arith.mulf %275, %263 : vector<8x32xf32>
    %280 = arith.mulf %274, %278 : vector<8x32xf32>
    %281 = arith.addf %279, %280 : vector<8x32xf32>
    %282 = math.tanh %281 : vector<8x32xf32>
    %283 = arith.mulf %276, %282 : vector<8x32xf32>
    %284 = vector.extract_strided_slice %208 {offsets = [32, 0], sizes = [8, 128], strides = [1, 1]} : vector<64x128xf32> to vector<8x128xf32>
    %cst_66 = arith.constant dense<0.000000e+00> : vector<8x128xf32>
    %285 = tpu.matmul %283, %209, %cst_66 {dimension_numbers = #tpu.dot_dimension_numbers<[1], [0], [0], [1], [0, 0, 1, 1], [], []>} : vector<8x32xf32>, vector<32x128xf32>, vector<8x128xf32> -> vector<8x128xf32>
    %286 = arith.addf %284, %285 : vector<8x128xf32>
    %287 = arith.negf %286 : vector<8x128xf32>
    %288 = math.exp %287 : vector<8x128xf32>
    %cst_67 = arith.constant 1.000000e+00 : f32
    %289 = vector.broadcast %cst_67 : f32 to vector<8x128xf32>
    %290 = arith.addf %289, %288 : vector<8x128xf32>
    %291 = arith.divf %289, %290 : vector<8x128xf32>
    %292 = vector.extract_strided_slice %291 {offsets = [0, 0], sizes = [8, 32], strides = [1, 1]} : vector<8x128xf32> to vector<8x32xf32>
    %293 = vector.extract_strided_slice %291 {offsets = [0, 32], sizes = [8, 32], strides = [1, 1]} : vector<8x128xf32> to vector<8x32xf32>
    %294 = vector.extract_strided_slice %291 {offsets = [0, 96], sizes = [8, 32], strides = [1, 1]} : vector<8x128xf32> to vector<8x32xf32>
    %295 = vector.extract_strided_slice %286 {offsets = [0, 64], sizes = [8, 32], strides = [1, 1]} : vector<8x128xf32> to vector<8x32xf32>
    %296 = math.tanh %295 : vector<8x32xf32>
    %297 = arith.mulf %293, %281 : vector<8x32xf32>
    %298 = arith.mulf %292, %296 : vector<8x32xf32>
    %299 = arith.addf %297, %298 : vector<8x32xf32>
    %300 = math.tanh %299 : vector<8x32xf32>
    %301 = arith.mulf %294, %300 : vector<8x32xf32>
    %302 = vector.extract_strided_slice %208 {offsets = [40, 0], sizes = [8, 128], strides = [1, 1]} : vector<64x128xf32> to vector<8x128xf32>
    %cst_68 = arith.constant dense<0.000000e+00> : vector<8x128xf32>
    %303 = tpu.matmul %301, %209, %cst_68 {dimension_numbers = #tpu.dot_dimension_numbers<[1], [0], [0], [1], [0, 0, 1, 1], [], []>} : vector<8x32xf32>, vector<32x128xf32>, vector<8x128xf32> -> vector<8x128xf32>
    %304 = arith.addf %302, %303 : vector<8x128xf32>
    %305 = arith.negf %304 : vector<8x128xf32>
    %306 = math.exp %305 : vector<8x128xf32>
    %cst_69 = arith.constant 1.000000e+00 : f32
    %307 = vector.broadcast %cst_69 : f32 to vector<8x128xf32>
    %308 = arith.addf %307, %306 : vector<8x128xf32>
    %309 = arith.divf %307, %308 : vector<8x128xf32>
    %310 = vector.extract_strided_slice %309 {offsets = [0, 0], sizes = [8, 32], strides = [1, 1]} : vector<8x128xf32> to vector<8x32xf32>
    %311 = vector.extract_strided_slice %309 {offsets = [0, 32], sizes = [8, 32], strides = [1, 1]} : vector<8x128xf32> to vector<8x32xf32>
    %312 = vector.extract_strided_slice %309 {offsets = [0, 96], sizes = [8, 32], strides = [1, 1]} : vector<8x128xf32> to vector<8x32xf32>
    %313 = vector.extract_strided_slice %304 {offsets = [0, 64], sizes = [8, 32], strides = [1, 1]} : vector<8x128xf32> to vector<8x32xf32>
    %314 = math.tanh %313 : vector<8x32xf32>
    %315 = arith.mulf %311, %299 : vector<8x32xf32>
    %316 = arith.mulf %310, %314 : vector<8x32xf32>
    %317 = arith.addf %315, %316 : vector<8x32xf32>
    %318 = math.tanh %317 : vector<8x32xf32>
    %319 = arith.mulf %312, %318 : vector<8x32xf32>
    %320 = vector.extract_strided_slice %208 {offsets = [48, 0], sizes = [8, 128], strides = [1, 1]} : vector<64x128xf32> to vector<8x128xf32>
    %cst_70 = arith.constant dense<0.000000e+00> : vector<8x128xf32>
    %321 = tpu.matmul %319, %209, %cst_70 {dimension_numbers = #tpu.dot_dimension_numbers<[1], [0], [0], [1], [0, 0, 1, 1], [], []>} : vector<8x32xf32>, vector<32x128xf32>, vector<8x128xf32> -> vector<8x128xf32>
    %322 = arith.addf %320, %321 : vector<8x128xf32>
    %323 = arith.negf %322 : vector<8x128xf32>
    %324 = math.exp %323 : vector<8x128xf32>
    %cst_71 = arith.constant 1.000000e+00 : f32
    %325 = vector.broadcast %cst_71 : f32 to vector<8x128xf32>
    %326 = arith.addf %325, %324 : vector<8x128xf32>
    %327 = arith.divf %325, %326 : vector<8x128xf32>
    %328 = vector.extract_strided_slice %327 {offsets = [0, 0], sizes = [8, 32], strides = [1, 1]} : vector<8x128xf32> to vector<8x32xf32>
    %329 = vector.extract_strided_slice %327 {offsets = [0, 32], sizes = [8, 32], strides = [1, 1]} : vector<8x128xf32> to vector<8x32xf32>
    %330 = vector.extract_strided_slice %327 {offsets = [0, 96], sizes = [8, 32], strides = [1, 1]} : vector<8x128xf32> to vector<8x32xf32>
    %331 = vector.extract_strided_slice %322 {offsets = [0, 64], sizes = [8, 32], strides = [1, 1]} : vector<8x128xf32> to vector<8x32xf32>
    %332 = math.tanh %331 : vector<8x32xf32>
    %333 = arith.mulf %329, %317 : vector<8x32xf32>
    %334 = arith.mulf %328, %332 : vector<8x32xf32>
    %335 = arith.addf %333, %334 : vector<8x32xf32>
    %336 = math.tanh %335 : vector<8x32xf32>
    %337 = arith.mulf %330, %336 : vector<8x32xf32>
    %338 = vector.extract_strided_slice %208 {offsets = [56, 0], sizes = [8, 128], strides = [1, 1]} : vector<64x128xf32> to vector<8x128xf32>
    %cst_72 = arith.constant dense<0.000000e+00> : vector<8x128xf32>
    %339 = tpu.matmul %337, %209, %cst_72 {dimension_numbers = #tpu.dot_dimension_numbers<[1], [0], [0], [1], [0, 0, 1, 1], [], []>} : vector<8x32xf32>, vector<32x128xf32>, vector<8x128xf32> -> vector<8x128xf32>
    %340 = arith.addf %338, %339 : vector<8x128xf32>
    %341 = arith.negf %340 : vector<8x128xf32>
    %342 = math.exp %341 : vector<8x128xf32>
    %cst_73 = arith.constant 1.000000e+00 : f32
    %343 = vector.broadcast %cst_73 : f32 to vector<8x128xf32>
    %344 = arith.addf %343, %342 : vector<8x128xf32>
    %345 = arith.divf %343, %344 : vector<8x128xf32>
    %346 = vector.extract_strided_slice %345 {offsets = [0, 0], sizes = [8, 32], strides = [1, 1]} : vector<8x128xf32> to vector<8x32xf32>
    %347 = vector.extract_strided_slice %345 {offsets = [0, 32], sizes = [8, 32], strides = [1, 1]} : vector<8x128xf32> to vector<8x32xf32>
    %348 = vector.extract_strided_slice %345 {offsets = [0, 96], sizes = [8, 32], strides = [1, 1]} : vector<8x128xf32> to vector<8x32xf32>
    %349 = vector.extract_strided_slice %340 {offsets = [0, 64], sizes = [8, 32], strides = [1, 1]} : vector<8x128xf32> to vector<8x32xf32>
    %350 = math.tanh %349 : vector<8x32xf32>
    %351 = arith.mulf %347, %335 : vector<8x32xf32>
    %352 = arith.mulf %346, %350 : vector<8x32xf32>
    %353 = arith.addf %351, %352 : vector<8x32xf32>
    %354 = math.tanh %353 : vector<8x32xf32>
    %355 = arith.mulf %348, %354 : vector<8x32xf32>
    %356 = arith.mulf %355, %355 : vector<8x32xf32>
    %cst_74 = arith.constant dense<0.000000e+00> : vector<8xf32>
    %357 = vector.multi_reduction <add>, %356, %cst_74 [1] : vector<8x32xf32> to vector<8xf32>
    %358 = vector.shape_cast %357 : vector<8xf32> to vector<8x1xf32>
    %359 = math.sqrt %358 : vector<8x1xf32>
    %cst_75 = arith.constant 9.99999996E-13 : f32
    %360 = vector.broadcast %cst_75 : f32 to vector<8x1xf32>
    %361 = arith.maximumf %359, %360 : vector<8x1xf32>
    %362 = vector.broadcast %361 : vector<8x1xf32> to vector<8x32xf32>
    %363 = arith.divf %355, %362 : vector<8x32xf32>
    %c96 = arith.constant 96 : index
    %c0_76 = arith.constant 0 : index
    %364 = vector.load %arg2[%c96, %c0_76] : memref<130x128xf32, #tpu.memory_space<vmem>>, vector<32x128xf32>
    %cst_77 = arith.constant dense<0.000000e+00> : vector<8x128xf32>
    %365 = tpu.matmul %363, %364, %cst_77 {dimension_numbers = #tpu.dot_dimension_numbers<[1], [0], [0], [1], [0, 0, 1, 1], [], []>, precision = #tpu.contract_precision<fp32>} : vector<8x32xf32>, vector<32x128xf32>, vector<8x128xf32> -> vector<8x128xf32>
    %366 = arith.negf %365 : vector<8x128xf32>
    %367 = math.exp %366 : vector<8x128xf32>
    %cst_78 = arith.constant 1.000000e+00 : f32
    %368 = vector.broadcast %cst_78 : f32 to vector<8x128xf32>
    %369 = arith.addf %368, %367 : vector<8x128xf32>
    %370 = arith.divf %368, %369 : vector<8x128xf32>
    %cst_79 = arith.constant 0.000000e+00 : f32
    %371 = vector.broadcast %cst_79 : f32 to vector<8x128xf32>
    %c0_80 = arith.constant 0 : index
    %c0_81 = arith.constant 0 : index
    %372 = vector.load %arg3[%c0_80, %c0_81] : memref<8x128xf32, #tpu.memory_space<vmem>>, vector<8x128xf32>
    tpu.vector_store %arg3[%c0_80, %c0_81], %371 {strides = array<i32>} : memref<8x128xf32, #tpu.memory_space<vmem>>, vector<8x128xf32>,
    %c0_82 = arith.constant 0 : index
    %c0_83 = arith.constant 0 : index
    %373 = vector.load %arg3[%c0_82, %c0_83] : memref<8x128xf32, #tpu.memory_space<vmem>>, vector<8x32xf32>
    tpu.vector_store %arg3[%c0_82, %c0_83], %363 {strides = array<i32>} : memref<8x128xf32, #tpu.memory_space<vmem>>, vector<8x32xf32>,
    %374 = vector.extract_strided_slice %370 {offsets = [0, 0], sizes = [8, 32], strides = [1, 1]} : vector<8x128xf32> to vector<8x32xf32>
    %c0_84 = arith.constant 0 : index
    %c32_85 = arith.constant 32 : index
    %375 = vector.load %arg3[%c0_84, %c32_85] : memref<8x128xf32, #tpu.memory_space<vmem>>, vector<8x32xf32>
    tpu.vector_store %arg3[%c0_84, %c32_85], %374 {strides = array<i32>} : memref<8x128xf32, #tpu.memory_space<vmem>>, vector<8x32xf32>,
    return
  }
}

</mosaic_0001>

<bundles_post_ra>
// kernel: lstm_pt_v2_forward.1
= control target key start
LH: loop header
LB: loop body
LE: loop exit
PB: predicated region body
PF: predicated region fallthrough
CT: control target
= control target key end

     0   :  { %vm26_vm0 = vcmask 130048   ;;  %v4956_v3 = vmov 0.0   ;;  %vm4958_vm1 = vmmov 0   ;;  %s4959_s17 = smov 64   ;;  %s4960_s18 = smov 32   ;;  %vm1007_vm2 = vcmask 261248   ;;  %s5699_s1 = inlined_call_operand.vmem [shape: f32[16,256], index: 1, kind: input, shape index: {}]   ;;  %s5700_s0 = inlined_call_operand.vmem [shape: f32[64,16], index: 0, kind: input, shape index: {}]   ;;  %s5701_s2 = inlined_call_operand.vmem [shape: f32[130,128], index: 2, kind: input, shape index: {}]   ;;  %s5702_s3 = inlined_call_operand.vmem [shape: f32[8,128], index: 3, kind: output, shape index: {}]  }
   0x1   :  { %v23_v0 = vld [vmem:[%s5699_s1 + $0x8] sm:$0xff]  ;;  %v25_v1 = vld [vmem:[%s5699_s1 + $0x18] sm:$0xff]  ;;  %v22_v2 = vld [vmem:[%s5699_s1] sm:$0xff]  ;;  %119 = vmatprep.mubr.f32.mxu0 %v4956_v3  ;;  %141 = vmatprep.mubr.f32.mxu1 %v4956_v3  ;;  %vm903_vm3 = vcmask 261120   ;;  %3881 = vst [vmem:[%s5702_s3] sm:$0xff] %v4956_v3  ;;  %vm3888_vm6 = vcmask 523520  }
   0x2   :  { %v51_v4 = vand.u32 4294901760, %v23_v0  ;;  %v55_v5 = vand.u32 4294901760, %v25_v1  ;;  %v24_v6 = vld [vmem:[%s5699_s1 + $0x10] sm:$0xff]  ;;  %v53_v7 = vand.u32 4294901760, %v22_v2  ;;  %v14_v8 = vld [vmem:[%s5700_s0] sm:$0xff]  ;;  %v15_v9 = vld [vmem:[%s5700_s0 + $0x8] sm:$0xff] }
   0x3   :  { %v57_v10 = vand.u32 4294901760, %v24_v6  ;;  %v28_v11 = vsel %vm26_vm0, %v14_v8, 0  ;;  %v31_v12 = vsel %vm26_vm0, %v15_v9, 0  ;;  %v16_v43 = vld [vmem:[%s5700_s0 + $0x10] sm:$0xff]  ;;  %v17_v47 = vld [vmem:[%s5700_s0 + $0x18] sm:$0xff]  ;;  %v18_v51 = vld [vmem:[%s5700_s0 + $0x20] sm:$0xff] }
   0x4   :  { %v5003_v13 = vpack.c.bf16 %v55_v5, %v51_v4  ;;  %v215_v14 = vsub.f32 %v22_v2, %v53_v7  ;;  %v5005_v15 = vand.u32 4294901760, %v28_v11  ;;  %v5007_v16 = vsub.f32 %v23_v0, %v51_v4  ;;  %v19_v56 = vld [vmem:[%s5700_s0 + $0x28] sm:$0xff]  ;;  %v20_v63 = vld [vmem:[%s5700_s0 + $0x30] sm:$0xff]  ;;  %v898_v8 = vld [vmem:[%s5701_s2] sm:$0xff] }
   0x5   :  { %v5009_v17 = vpack.c.bf16 %v57_v10, %v53_v7  ;;  %v227_v18 = vsub.f32 %v24_v6, %v57_v10  ;;  %v5011_v19 = vsub.f32 %v25_v1, %v55_v5  ;;  %v5013_v20 = vand.u32 4294901760, %v31_v12  ;;  %v899_v9 = vld [vmem:[%s5701_s2 + $0x8] sm:$0xff]  ;;  %v21_v10 = vld [vmem:[%s5700_s0 + $0x38] sm:$0xff] }
   0x6   :  { %4472 = vmatprep.subr.bf16.mxu0 %v5003_v13  ;;  %v5017_v21 = vsub.f32 %v28_v11, %v5005_v15  ;;  %v210_v22 = vand.u32 4294901760, %v5007_v16  ;;  %v216_v23 = vand.u32 4294901760, %v215_v14  ;;  %4675 = vmatprep.subr.bf16.mxu1 %v5003_v13  ;;  %v34_v45 = vsel %vm26_vm0, %v16_v43, 0 }
   0x7   :  { %4474 = vmatpush1.bf16.msra.mxu0 %v5009_v17  ;;  %v222_v24 = vand.u32 4294901760, %v5011_v19  ;;  %v228_v25 = vand.u32 4294901760, %v227_v18  ;;  %v5024_v26 = vsub.f32 %v31_v12, %v5013_v20  ;;  %4676 = vmatpush1.bf16.msra.mxu1 %v5009_v17  ;;  %v4479_v42 = vpack.c.bf16 %v5011_v19, %v5007_v16 }
   0x8   :  { %v122_v27 = vand.u32 4294901760, %v5017_v21  ;;  %v211_v28 = vsub.f32 %v5007_v16, %v210_v22  ;;  %v217_v29 = vsub.f32 %v215_v14, %v216_v23  ;;  %v4481_v48 = vpack.c.bf16 %v227_v18, %v215_v14 }
   0x9   :  { %v223_v30 = vsub.f32 %v5011_v19, %v222_v24  ;;  %v229_v31 = vsub.f32 %v227_v18, %v228_v25  ;;  %v133_v32 = vand.u32 4294901760, %v5024_v26  ;;  %v5048_v46 = vpack.c.bf16 %v228_v25, %v216_v23 }
   0xa   :  { %v123_v33 = vsub.f32 %v5017_v21, %v122_v27  ;;  %v212_v34 = vand.u32 4294901760, %v211_v28  ;;  %v218_v35 = vand.u32 4294901760, %v217_v29  ;;  %v5054_v49 = vand.u32 4294901760, %v34_v45 }
   0xb   :  { %v224_v36 = vand.u32 4294901760, %v223_v30  ;;  %v230_v37 = vand.u32 4294901760, %v229_v31  ;;  %v134_v38 = vsub.f32 %v5024_v26, %v133_v32  ;;  %v37_v50 = vsel %vm26_vm0, %v17_v47, 0 }
   0xc   :  { %v124_v39 = vand.u32 4294901760, %v123_v33  ;;  %v5061_v52 = vsub.f32 %v34_v45, %v5054_v49  ;;  %v5065_v53 = vand.u32 4294901760, %v37_v50  ;;  %v40_v55 = vsel %vm26_vm0, %v18_v51, 0 }
   0xd   :  { %v4475_v40 = vpack.c.bf16 %v224_v36, %v212_v34  ;;  %v4477_v41 = vpack.c.bf16 %v230_v37, %v218_v35  ;;  %v135_v44 = vand.u32 4294901760, %v134_v38  ;;  %v5081_v59 = vand.u32 4294901760, %v40_v55  ;;  %v900_v38 = vld [vmem:[%s5701_s2 + $0x10] sm:$0xff] }
   0xe   :  { %125 = vmatmul.mubr.f32.vlgmr.msra.gmra.mrb[0].mxu0 %v124_v39  ;;  %v144_v54 = vand.u32 4294901760, %v5061_v52  ;;  %v5074_v57 = vsub.f32 %v37_v50, %v5065_v53  ;;  %v43_v62 = vsel %vm26_vm0, %v19_v56, 0  ;;  %v4957_v5 = vmov 0.0|0.0   ;;  %v901_v39 = vld [vmem:[%s5701_s2 + $0x18] sm:$0xff] }
   0xf   :  { %4476 = vmatprep.subr.bf16.mxu0 %v4475_v40  ;;  %130 = vmatprep.mubr.f32.mxu0 %v4956_v3  ;;  %v5089_v0 = vsub.f32 %v40_v55, %v5081_v59  ;;  %v5097_v2 = vand.u32 4294901760, %v43_v62  ;;  %v46_v7 = vsel %vm26_vm0, %v20_v63, 0  ;;  %v5114_v12 = vpack.c.bf16 %v899_v9, %v898_v8 }
  0x10   :  { %4478 = vmatpush1.bf16.msra.mxu0 %v4477_v41  ;;  %v145_v58 = vsub.f32 %v5061_v52, %v144_v54  ;;  %v155_v60 = vand.u32 4294901760, %v5074_v57  ;;  %4495 = vmatprep.subr.bf16.mxu1 %v4957_v5  ;;  %v5122_v18 = vand.u32 4294901760, %v46_v7  ;;  %v49_v28 = vsel %vm26_vm0, %v21_v10, 0 }
  0x11   :  { %4480 = vmatprep.subr.bf16.mxu0 %v4479_v42  ;;  %v166_v4 = vand.u32 4294901760, %v5089_v0  ;;  %v5112_v11 = vsub.f32 %v43_v62, %v5097_v2  ;;  %v5137_v31 = vand.u32 4294901760, %v49_v28  ;;  %v5156_v41 = vpack.c.bf16 %v901_v39, %v900_v38 }
  0x12   :  { %136 = vmatmul.mubr.f32.gmra.mrb[2].mxu0 %v135_v44  ;;  %v146_v61 = vand.u32 4294901760, %v145_v58  ;;  %v156_v1 = vsub.f32 %v5074_v57, %v155_v60  ;;  %v5129_v29 = vsub.f32 %v46_v7, %v5122_v18  ;;  %v4487_v44 = vpack.c.bf16 %v222_v24, %v210_v22 }
  0x13   :  { %292 = vmatprep.mubr.f32.mxu0 %v4956_v3  ;;  %v167_v14 = vsub.f32 %v5089_v0, %v166_v4  ;;  %v177_v23 = vand.u32 4294901760, %v5112_v11  ;;  %v5141_v35 = vsub.f32 %v49_v28, %v5137_v31 }
  0x14   :  { %147 = vmatmul.mubr.f32.vlgmr.msra.gmra.mrb[0].mxu1 %v146_v61  ;;  %v157_v6 = vand.u32 4294901760, %v156_v1  ;;  %v188_v33 = vand.u32 4294901760, %v5129_v29 }
  0x15   :  { %152 = vmatprep.mubr.f32.mxu1 %v4956_v3  ;;  %4497 = vmatpush3.bf16.msra.mxu1 %v5114_v12  ;;  %v168_v25 = vand.u32 4294901760, %v167_v14  ;;  %v178_v30 = vsub.f32 %v5112_v11, %v177_v23  ;;  %v199_v37 = vand.u32 4294901760, %v5141_v35 }
  0x16   :  { %294 = vmatmul.mubr.f32.vlgmr.msra.gmra.mrb[0].mxu0 %v5005_v15  ;;  %4498 = vmatprep.subr.bf16.mxu1 %v4957_v5  ;;  %v189_v36 = vsub.f32 %v5129_v29, %v188_v33 }
  0x17   :  { %4482 = vmatpush1.bf16.msra.mxu0 %v4481_v48  ;;  %299 = vmatprep.mubr.f32.mxu0 %v4956_v3  ;;  %v179_v34 = vand.u32 4294901760, %v178_v30  ;;  %v200_v42 = vsub.f32 %v5141_v35, %v199_v37 }
  0x18   :  { %4484 = vmatprep.subr.bf16.mxu0 %v5003_v13  ;;  %158 = vmatmul.mubr.f32.gmra.mrb[2].mxu1 %v157_v6  ;;  %v190_v40 = vand.u32 4294901760, %v189_v36 }
  0x19   :  { %163 = vmatprep.mubr.f32.mxu1 %v4956_v3  ;;  %4500 = vmatpush3.bf16.msra.mxu1 %v5156_v41  ;;  %v201_v43 = vand.u32 4294901760, %v200_v42 }
  0x1a   :  { %301 = vmatmul.mubr.f32.gmra.mrb[2].mxu0 %v5013_v20  ;;  %4501 = vmatprep.subr.bf16.mxu1 %v4957_v5 }
  0x1b   :  { %306 = vmatprep.mubr.f32.mxu0 %v4956_v3 }
  0x1c   :  { %169 = vmatmul.mubr.f32.gmra.mrb[4].mxu1 %v168_v25 }
  0x1d   :  { %174 = vmatprep.mubr.f32.mxu1 %v4956_v3 }
  0x1e   :  { %308 = vmatmul.mubr.f32.gmra.mrb[4].mxu0 %v5054_v49 }
  0x1f   :  { %313 = vmatprep.mubr.f32.mxu0 %v4956_v3 }
  0x20   :  { %180 = vmatmul.mubr.f32.gmra.mrb[6].mxu1 %v179_v34 }
  0x21   :  { %185 = vmatprep.mubr.f32.mxu1 %v4956_v3 }
  0x22   :  { %315 = vmatmul.mubr.f32.gmra.mrb[6].mxu0 %v5065_v53 }
  0x23   :  { %320 = vmatprep.mubr.f32.mxu0 %v4956_v3 }
  0x24   :  { %191 = vmatmul.mubr.f32.gmra.mrb[8].mxu1 %v190_v40 }
  0x25   :  { %196 = vmatprep.mubr.f32.mxu1 %v4956_v3 }
  0x26   :  { %322 = vmatmul.mubr.f32.gmra.mrb[8].mxu0 %v5081_v59 }
  0x27   :  { %327 = vmatprep.mubr.f32.mxu0 %v4956_v3 }
  0x28   :  { %202 = vmatmul.mubr.f32.gmra.mrb[10].mxu1 %v201_v43 }
  0x29   :  { %4117 = vmatprep.mubr.msk.f32.mxu1 %vm4958_vm1, %v4956_v3 }
  0x2a   :  { %329 = vmatmul.mubr.f32.gmra.mrb[10].mxu0 %v5097_v2 }
  0x2b   :  { %334 = vmatprep.mubr.f32.mxu0 %v4956_v3 }
  0x2c   :  { %4118 = vmatmul.mubr.f32.vlgmr.msra.gmra.mrb[12].mxu1 %v4956_v3 }
  0x2d   :  { %4503 = vmatpush3.bf16.msra.mxu1 %v5114_v12  ;;  %4128 = vmatprep.mubr.msk.f32.mxu1 %vm4958_vm1, %v4956_v3 }
  0x2e   :  { %336 = vmatmul.mubr.f32.gmra.mrb[12].mxu0 %v5122_v18  ;;  %4504 = vmatprep.subr.bf16.mxu1 %v4957_v5 }
  0x2f   :  { %341 = vmatprep.mubr.f32.mxu0 %v4956_v3 }
  0x31   :  { %4506 = vmatpush3.bf16.msra.mxu1 %v5156_v41 }
  0x32   :  { %343 = vmatmul.mubr.f32.gmra.mrb[14].mxu0 %v5137_v31  ;;  %4507 = vmatprep.subr.bf16.mxu1 %v4957_v5 }
  0x33   :  { %421 = vmatprep.mubr.f32.mxu0 %v4956_v3 }
  0x36   :  { %424 = vmatmul.mubr.f32.vlgmr.msra.gmra.mrb[0].mxu0 %v5017_v21 }
  0x37   :  { %4486 = vmatpush1.bf16.msra.mxu0 %v5009_v17  ;;  %429 = vmatprep.mubr.f32.mxu0 %v4956_v3 }
  0x38   :  { %4488 = vmatprep.subr.bf16.mxu0 %v4487_v44 }
  0x3a   :  { %432 = vmatmul.mubr.f32.gmra.mrb[2].mxu0 %v5024_v26 }
  0x3b   :  { %437 = vmatprep.mubr.f32.mxu0 %v4956_v3 }
  0x3e   :  { %440 = vmatmul.mubr.f32.gmra.mrb[4].mxu0 %v5061_v52 }
  0x3f   :  { %445 = vmatprep.mubr.f32.mxu0 %v4956_v3 }
  0x42   :  { %448 = vmatmul.mubr.f32.gmra.mrb[6].mxu0 %v5074_v57 }
  0x43   :  { %453 = vmatprep.mubr.f32.mxu0 %v4956_v3 }
  0x46   :  { %456 = vmatmul.mubr.f32.gmra.mrb[8].mxu0 %v5089_v0 }
  0x47   :  { %461 = vmatprep.mubr.f32.mxu0 %v4956_v3 }
  0x4a   :  { %464 = vmatmul.mubr.f32.gmra.mrb[10].mxu0 %v5112_v11 }
  0x4b   :  { %469 = vmatprep.mubr.f32.mxu0 %v4956_v3 }
  0x4e   :  { %472 = vmatmul.mubr.f32.gmra.mrb[12].mxu0 %v5129_v29 }
  0x4f   :  { %477 = vmatprep.mubr.f32.mxu0 %v4956_v3 }
  0x52   :  { %480 = vmatmul.mubr.f32.gmra.mrb[14].mxu0 %v5141_v35 }
  0x53   :  { %554 = vmatprep.mubr.f32.mxu0 %v4956_v3 }
  0x56   :  { %558 = vmatmul.mubr.f32.vlgmr.msra.gmra.mrb[0].mxu0 %v122_v27 }
  0x57   :  { %4490 = vmatpush1.bf16.msra.mxu0 %v5048_v46  ;;  %563 = vmatprep.mubr.f32.mxu0 %v4956_v3 }
  0x58   :  { %4492 = vmatprep.subr.bf16.mxu0 %v5003_v13 }
  0x5a   :  { %567 = vmatmul.mubr.f32.gmra.mrb[2].mxu0 %v133_v32 }
  0x5b   :  { %572 = vmatprep.mubr.f32.mxu0 %v4956_v3 }
  0x5e   :  { %576 = vmatmul.mubr.f32.gmra.mrb[4].mxu0 %v144_v54 }
  0x5f   :  { %581 = vmatprep.mubr.f32.mxu0 %v4956_v3 }
  0x62   :  { %585 = vmatmul.mubr.f32.gmra.mrb[6].mxu0 %v155_v60 }
  0x63   :  { %590 = vmatprep.mubr.f32.mxu0 %v4956_v3 }
  0x66   :  { %594 = vmatmul.mubr.f32.gmra.mrb[8].mxu0 %v166_v4 }
  0x67   :  { %599 = vmatprep.mubr.f32.mxu0 %v4956_v3 }
  0x6a   :  { %603 = vmatmul.mubr.f32.gmra.mrb[10].mxu0 %v177_v23 }
  0x6b   :  { %608 = vmatprep.mubr.f32.mxu0 %v4956_v3 }
  0x6e   :  { %612 = vmatmul.mubr.f32.gmra.mrb[12].mxu0 %v188_v33 }
  0x6f   :  { %617 = vmatprep.mubr.f32.mxu0 %v4956_v3 }
  0x72   :  { %621 = vmatmul.mubr.f32.gmra.mrb[14].mxu0 %v199_v37 }
  0x73   :  { %703 = vmatprep.mubr.f32.mxu0 %v4956_v3 }
  0x76   :  { %705 = vmatmul.mubr.f32.vlgmr.msra.gmra.mrb[0].mxu0 %v5005_v15 }
  0x77   :  { %4494 = vmatpush1.bf16.msra.mxu0 %v5009_v17  ;;  %710 = vmatprep.mubr.f32.mxu0 %v4956_v3 }
  0x78   :  { %4615 = vmatprep.subr.bf16.mxu0 %v4957_v5 }
  0x7a   :  { %712 = vmatmul.mubr.f32.gmra.mrb[2].mxu0 %v5013_v20 }
  0x7b   :  { %717 = vmatprep.mubr.f32.mxu0 %v4956_v3 }
  0x7e   :  { %719 = vmatmul.mubr.f32.gmra.mrb[4].mxu0 %v5054_v49 }
  0x7f   :  { %724 = vmatprep.mubr.f32.mxu0 %v4956_v3 }
  0x82   :  { %726 = vmatmul.mubr.f32.gmra.mrb[6].mxu0 %v5065_v53 }
  0x83   :  { %731 = vmatprep.mubr.f32.mxu0 %v4956_v3 }
  0x86   :  { %733 = vmatmul.mubr.f32.gmra.mrb[8].mxu0 %v5081_v59 }
  0x87   :  { %738 = vmatprep.mubr.f32.mxu0 %v4956_v3 }
  0x8a   :  { %740 = vmatmul.mubr.f32.gmra.mrb[10].mxu0 %v5097_v2 }
  0x8b   :  { %745 = vmatprep.mubr.f32.mxu0 %v4956_v3 }
  0x8e   :  { %747 = vmatmul.mubr.f32.gmra.mrb[12].mxu0 %v5122_v18 }
  0x8f   :  { %752 = vmatprep.mubr.f32.mxu0 %v4956_v3 }
  0x92   :  { %754 = vmatmul.mubr.f32.gmra.mrb[14].mxu0 %v5137_v31 }
  0x93   :  { %828 = vmatprep.mubr.f32.mxu0 %v4956_v3 }
  0x96   :  { %830 = vmatmul.mubr.f32.vlgmr.msra.gmra.mrb[0].mxu0 %v5005_v15 }
  0x97   :  { %835 = vmatprep.mubr.f32.mxu0 %v4956_v3 }
  0x9a   :  { %837 = vmatmul.mubr.f32.gmra.mrb[2].mxu0 %v5013_v20 }
  0x9b   :  { %842 = vmatprep.mubr.f32.mxu0 %v4956_v3 }
  0x9e   :  { %844 = vmatmul.mubr.f32.gmra.mrb[4].mxu0 %v5054_v49  ;;  %v3894_v49 = vld [vmem:[%s5701_s2 + $0x80] ss:$0 sm:$0xff] }
  0x9f   :  { %849 = vmatprep.mubr.f32.mxu0 %v4956_v3 }
  0xa2   :  { %851 = vmatmul.mubr.f32.gmra.mrb[6].mxu0 %v5065_v53 }
  0xa3   :  { %856 = vmatprep.mubr.f32.mxu0 %v4956_v3 }
  0xa6   :  { %858 = vmatmul.mubr.f32.gmra.mrb[8].mxu0 %v5081_v59 }
  0xa7   :  { %863 = vmatprep.mubr.f32.mxu0 %v4956_v3 }
  0xaa   :  { %865 = vmatmul.mubr.f32.gmra.mrb[10].mxu0 %v5097_v2 }
  0xab   :  { %870 = vmatprep.mubr.f32.mxu0 %v4956_v3 }
  0xae   :  { %872 = vmatmul.mubr.f32.gmra.mrb[12].mxu0 %v5122_v18 }
  0xaf   :  { %877 = vmatprep.mubr.f32.mxu0 %v4956_v3 }
  0xb2   :  { %879 = vmatmul.mubr.f32.gmra.mrb[14].mxu0 %v5137_v31 }
  0xb3   :  { %4369 = vmatprep.mubr.msk.f32.mxu0 %vm4958_vm1, %v4956_v3 }
  0xe7   :  { %v148_v13 = vpop.f32.mrb[0].mxu1 }
  0xe8   :  { %v150_v15 = vpop.f32.mrb[1].mxu1 }
  0xeb   :  { %v159_v16 = vpop.f32.mrb[2].mxu1 }
  0xec   :  { %v161_v17 = vpop.f32.mrb[3].mxu1 }
  0xef   :  { %v170_v19 = vpop.f32.mrb[4].mxu1 }
  0xf0   :  { %v172_v20 = vpop.f32.mrb[5].mxu1 }
  0xf3   :  { %v181_v21 = vpop.f32.mrb[6].mxu1 }
  0xf4   :  { %v183_v22 = vpop.f32.mrb[7].mxu1 }
  0xf7   :  { %v192_v24 = vpop.f32.mrb[8].mxu1 }
  0xf8   :  { %v194_v26 = vpop.f32.mrb[9].mxu1 }
  0xfb   :  { %v203_v27 = vpop.f32.mrb[10].mxu1 }
  0xfc   :  { %v205_v32 = vpop.f32.mrb[11].mxu1 }
  0xff   :  { %v973_v45 = vpop.f32.mrb[12].mxu1 }
 0x100   :  { %v4119_v46 = vpop.f32.mrb[13].mxu1 }
 0x169   :  { %v831_v47 = vpop.f32.mrb[0].mxu0 }
 0x16a   :  { %v833_v48 = vpop.f32.mrb[1].mxu0  ;;  %v890_v38 = vadd.f32 %v3894_v49, %v831_v47 }
 0x16d   :  { %v838_v50 = vpop.f32.mrb[2].mxu0 }
 0x16e   :  { %v891_v51 = vadd.f32 %v3894_v49, %v838_v50  ;;  %v840_v52 = vpop.f32.mrb[3].mxu0 }
 0x171   :  { %v845_v53 = vpop.f32.mrb[4].mxu0 }
 0x172   :  { %v4677_v54 = vadd.f32 %v845_v53, %v148_v13  ;;  %v847_v55 = vpop.f32.mrb[5].mxu0 }
 0x173   :  { %v4678_v56 = vadd.f32 %v847_v55, %v150_v15 }
 0x174   :  { %v892_v57 = vadd.f32 %v4677_v54, %v3894_v49 }
 0x175   :  { %v852_v58 = vpop.f32.mrb[6].mxu0 }
 0x176   :  { %v4679_v59 = vadd.f32 %v852_v58, %v159_v16  ;;  %v854_v60 = vpop.f32.mrb[7].mxu0 }
 0x177   :  { %v4680_v61 = vadd.f32 %v854_v60, %v161_v17 }
 0x178   :  { %v893_v62 = vadd.f32 %v4679_v59, %v3894_v49 }
 0x179   :  { %v859_v63 = vpop.f32.mrb[8].mxu0 }
 0x17a   :  { %v4681_v0 = vadd.f32 %v859_v63, %v170_v19  ;;  %v861_v1 = vpop.f32.mrb[9].mxu0 }
 0x17b   :  { %v4682_v2 = vadd.f32 %v861_v1, %v172_v20 }
 0x17c   :  { %v894_v4 = vadd.f32 %v4681_v0, %v3894_v49 }
 0x17d   :  { %v866_v6 = vpop.f32.mrb[10].mxu0  ;;  %v5258_v7 = vadd.f32 %v4682_v2, %v893_v62 }
 0x17e   :  { %v4683_v8 = vadd.f32 %v866_v6, %v181_v21  ;;  %v868_v9 = vpop.f32.mrb[11].mxu0  ;;  %v5260_v10 = vadd.f32 %v4680_v61, %v894_v4 }
 0x17f   :  { %v4684_v11 = vadd.f32 %v868_v9, %v183_v22 }
 0x180   :  { %v895_v14 = vadd.f32 %v4683_v8, %v3894_v49 }
 0x181   :  { %v873_v18 = vpop.f32.mrb[12].mxu0  ;;  %v5262_v23 = vadd.f32 %v4684_v11, %v892_v57 }
 0x182   :  { %v4685_v25 = vadd.f32 %v873_v18, %v192_v24  ;;  %v875_v28 = vpop.f32.mrb[13].mxu0  ;;  %v5264_v29 = vadd.f32 %v4678_v56, %v895_v14 }
 0x183   :  { %v4686_v30 = vadd.f32 %v875_v28, %v194_v26 }
 0x184   :  { %v896_v31 = vadd.f32 %v4685_v25, %v3894_v49 }
 0x185   :  { %v880_v33 = vpop.f32.mrb[14].mxu0  ;;  %v1009_v34 = vadd.f32 %v4686_v30, %v891_v51 }
 0x186   :  { %v4687_v35 = vadd.f32 %v880_v33, %v203_v27  ;;  %v882_v36 = vpop.f32.mrb[15].mxu0  ;;  %v5266_v37 = vadd.f32 %v896_v31, %v840_v52 }
 0x187   :  { %v4688_v39 = vadd.f32 %v882_v36, %v205_v32 }
 0x188   :  { %v897_v40 = vadd.f32 %v4687_v35, %v3894_v49 }
 0x189   :  { %v902_v42 = vadd.f32 %v4688_v39, %v890_v38 }
 0x18a   :  { %v5268_v43 = vadd.f32 %v897_v40, %v833_v48 }
 0x18b   :  { %v977_v44 = vadd.f32 %v973_v45, %v902_v42 }
 0x18d   :  { %4820 = vtanh.f32 %v977_v44  ;;  %v3895_v15 = vmul.f32 -1.442695, %v977_v44 }
 0x18f   :  { %4822 = vpow2.f32 %v3895_v15 }
 0x197   :  { %v4821_v13 = vpop.eup %4820 }
 0x198   :  { %987 = vrot.lane.b32.xlu0 %v4821_v13, %s4959_s17 }
 0x199   :  { %v4823_v16 = vpop.eup %4822 }
 0x19a   :  { %v981_v17 = vadd.f32 1.0, %v4823_v16 }
 0x19c   :  { %4824 = vrcp.f32 %v981_v17 }
 0x1a6   :  { %v4825_v19 = vpop.eup %4824 }
 0x1a7   :  { %v985_v22 = vmul.f32 0.0, %v4825_v19 }
 0x20a   :  { %v988_v20 = vpop.permute.xlu0 %987 }
 0x20b   :  { %v990_v21 = vmul.f32 %v4825_v19, %v988_v20 }
 0x20d   :  { %992 = vrot.lane.b32.xlu0 %v990_v21, %s4960_s18 }
 0x27f   :  { %v993_v24 = vpop.permute.xlu0 %992 }
 0x280   :  { %v995_v26 = vadd.f32 %v993_v24, %v985_v22 }
 0x282   :  { %4826 = vtanh.f32 %v995_v26 }
 0x28c   :  { %v4827_v27 = vpop.eup %4826 }
 0x28d   :  { %998 = vrot.lane.b32.xlu1 %v4827_v27, %s4959_s17 }
 0x2ff   :  { %v999_v32 = vpop.permute.xlu1 %998 }
 0x300   :  { %v1001_v45 = vmul.f32 %v4825_v19, %v999_v32 }
 0x302   :  { %1003 = vrot.lane.b32.xlu1 %v1001_v45, %s4960_s18 }
 0x374   :  { %v1004_v46 = vpop.permute.xlu1 %1003 }
 0x375   :  { %1006 = vst.msk [vmem:[#allocation2] sm:$0xff] %vm26_vm0, %v1004_v46  ;;  %4129 = vmatmul.mubr.msk.f32.vlgmr.msra.gmra.mrb[14].mxu1 %vm903_vm3, %v1004_v46 }
 0x376   :  { %1008 = vst.msk [vmem:[#allocation2 + $0x38] sm:$0xff] %vm1007_vm2, %v1004_v46  ;;  %4509 = vmatpush3.bf16.msra.mxu1 %v5114_v12  ;;  %4139 = vmatprep.mubr.msk.f32.mxu1 %vm4958_vm1, %v4956_v3 }
 0x377   :  { %4510 = vmatprep.subr.bf16.mxu1 %v4957_v5 }
 0x37a   :  { %4512 = vmatpush3.bf16.msra.mxu1 %v5156_v41 }
 0x37b   :  { %4513 = vmatprep.subr.bf16.mxu1 %v4957_v5 }
 0x448   :  { %v1078_v47 = vpop.f32.mrb[14].mxu1 }
 0x449   :  { %v1082_v48 = vadd.f32 %v1078_v47, %v1009_v34  ;;  %v4130_v49 = vpop.f32.mrb[15].mxu1 }
 0x44b   :  { %4828 = vtanh.f32 %v1082_v48  ;;  %v3897_v51 = vmul.f32 -1.442695, %v1082_v48 }
 0x44d   :  { %4830 = vpow2.f32 %v3897_v51 }
 0x455   :  { %v4829_v50 = vpop.eup %4828 }
 0x456   :  { %1092 = vrot.lane.b32.xlu0 %v4829_v50, %s4959_s17 }
 0x457   :  { %v4831_v52 = vpop.eup %4830 }
 0x458   :  { %v1086_v53 = vadd.f32 1.0, %v4831_v52 }
 0x45a   :  { %4832 = vrcp.f32 %v1086_v53 }
 0x464   :  { %v4833_v54 = vpop.eup %4832 }
 0x465   :  { %v1090_v57 = vmul.f32 %v4833_v54, %v995_v26 }
 0x4c8   :  { %v1093_v55 = vpop.permute.xlu0 %1092 }
 0x4c9   :  { %v1095_v56 = vmul.f32 %v4833_v54, %v1093_v55 }
 0x4cb   :  { %1097 = vrot.lane.b32.xlu1 %v1095_v56, %s4960_s18 }
 0x53d   :  { %v1098_v58 = vpop.permute.xlu1 %1097 }
 0x53e   :  { %v1100_v59 = vadd.f32 %v1098_v58, %v1090_v57 }
 0x540   :  { %4834 = vtanh.f32 %v1100_v59 }
 0x54a   :  { %v4835_v60 = vpop.eup %4834 }
 0x54b   :  { %1103 = vrot.lane.b32.xlu0 %v4835_v60, %s4959_s17 }
 0x5bd   :  { %v1104_v61 = vpop.permute.xlu0 %1103 }
 0x5be   :  { %v1106_v62 = vmul.f32 %v4833_v54, %v1104_v61 }
 0x5c0   :  { %1108 = vrot.lane.b32.xlu1 %v1106_v62, %s4960_s18 }
 0x632   :  { %v1109_v63 = vpop.permute.xlu1 %1108 }
 0x633   :  { %1111 = vst.msk [vmem:[#allocation2 + $0x8] sm:$0xff] %vm26_vm0, %v1109_v63  ;;  %4140 = vmatmul.mubr.msk.f32.vlgmr.msra.gmra.mrb[16].mxu1 %vm903_vm3, %v1109_v63 }
 0x634   :  { %1112 = vst.msk [vmem:[#allocation2 + $0x30] sm:$0xff] %vm1007_vm2, %v1109_v63  ;;  %4515 = vmatpush3.bf16.msra.mxu1 %v5114_v12  ;;  %4150 = vmatprep.mubr.msk.f32.mxu1 %vm4958_vm1, %v4956_v3 }
 0x635   :  { %4516 = vmatprep.subr.bf16.mxu1 %v4957_v5 }
 0x638   :  { %4518 = vmatpush3.bf16.msra.mxu1 %v5156_v41 }
 0x639   :  { %4519 = vmatprep.subr.bf16.mxu1 %v4957_v5 }
 0x706   :  { %v1182_v0 = vpop.f32.mrb[16].mxu1 }
 0x707   :  { %v1186_v1 = vadd.f32 %v1182_v0, %v5262_v23  ;;  %v4141_v2 = vpop.f32.mrb[17].mxu1 }
 0x709   :  { %4836 = vtanh.f32 %v1186_v1  ;;  %v3899_v6 = vmul.f32 -1.442695, %v1186_v1 }
 0x70b   :  { %4838 = vpow2.f32 %v3899_v6 }
 0x713   :  { %v4837_v4 = vpop.eup %4836 }
 0x714   :  { %1196 = vrot.lane.b32.xlu0 %v4837_v4, %s4959_s17 }
 0x715   :  { %v4839_v8 = vpop.eup %4838 }
 0x716   :  { %v1190_v9 = vadd.f32 1.0, %v4839_v8 }
 0x718   :  { %4840 = vrcp.f32 %v1190_v9 }
 0x722   :  { %v4841_v11 = vpop.eup %4840 }
 0x723   :  { %v1194_v25 = vmul.f32 %v4841_v11, %v1100_v59 }
 0x786   :  { %v1197_v14 = vpop.permute.xlu0 %1196 }
 0x787   :  { %v1199_v18 = vmul.f32 %v4841_v11, %v1197_v14 }
 0x789   :  { %1201 = vrot.lane.b32.xlu1 %v1199_v18, %s4960_s18 }
 0x7fb   :  { %v1202_v28 = vpop.permute.xlu1 %1201 }
 0x7fc   :  { %v1204_v30 = vadd.f32 %v1202_v28, %v1194_v25 }
 0x7fe   :  { %4842 = vtanh.f32 %v1204_v30 }
 0x808   :  { %v4843_v23 = vpop.eup %4842 }
 0x809   :  { %1207 = vrot.lane.b32.xlu0 %v4843_v23, %s4959_s17 }
 0x87b   :  { %v1208_v31 = vpop.permute.xlu0 %1207 }
 0x87c   :  { %v1210_v33 = vmul.f32 %v4841_v11, %v1208_v31 }
 0x87e   :  { %1212 = vrot.lane.b32.xlu1 %v1210_v33, %s4960_s18 }
 0x8f0   :  { %v1213_v34 = vpop.permute.xlu1 %1212 }
 0x8f1   :  { %1215 = vst.msk [vmem:[#allocation2 + $0x10] sm:$0xff] %vm26_vm0, %v1213_v34  ;;  %4151 = vmatmul.mubr.msk.f32.vlgmr.msra.gmra.mrb[18].mxu1 %vm903_vm3, %v1213_v34 }
 0x8f2   :  { %1216 = vst.msk [vmem:[#allocation2 + $0x28] sm:$0xff] %vm1007_vm2, %v1213_v34  ;;  %4521 = vmatpush3.bf16.msra.mxu1 %v5114_v12  ;;  %4161 = vmatprep.mubr.msk.f32.mxu1 %vm4958_vm1, %v4956_v3 }
 0x8f3   :  { %4522 = vmatprep.subr.bf16.mxu1 %v4957_v5 }
 0x8f6   :  { %4524 = vmatpush3.bf16.msra.mxu1 %v5156_v41 }
 0x8f7   :  { %4525 = vmatprep.subr.bf16.mxu1 %v4957_v5 }
 0x9c4   :  { %v1286_v35 = vpop.f32.mrb[18].mxu1 }
 0x9c5   :  { %v1290_v36 = vadd.f32 %v1286_v35, %v5258_v7  ;;  %v4152_v38 = vpop.f32.mrb[19].mxu1 }
 0x9c7   :  { %4844 = vtanh.f32 %v1290_v36  ;;  %v3901_v40 = vmul.f32 -1.442695, %v1290_v36 }
 0x9c9   :  { %4846 = vpow2.f32 %v3901_v40 }
 0x9d1   :  { %v4845_v39 = vpop.eup %4844 }
 0x9d2   :  { %1300 = vrot.lane.b32.xlu0 %v4845_v39, %s4959_s17 }
 0x9d3   :  { %v4847_v42 = vpop.eup %4846 }
 0x9d4   :  { %v1294_v44 = vadd.f32 1.0, %v4847_v42 }
 0x9d6   :  { %4848 = vrcp.f32 %v1294_v44 }
 0x9e0   :  { %v4849_v13 = vpop.eup %4848 }
 0x9e1   :  { %v1298_v17 = vmul.f32 %v4849_v13, %v1204_v30 }
 0xa44   :  { %v1301_v15 = vpop.permute.xlu0 %1300 }
 0xa45   :  { %v1303_v16 = vmul.f32 %v4849_v13, %v1301_v15 }
 0xa47   :  { %1305 = vrot.lane.b32.xlu1 %v1303_v16, %s4960_s18 }
 0xab9   :  { %v1306_v19 = vpop.permute.xlu1 %1305 }
 0xaba   :  { %v1308_v20 = vadd.f32 %v1306_v19, %v1298_v17 }
 0xabc   :  { %4850 = vtanh.f32 %v1308_v20 }
 0xac6   :  { %v4851_v7 = vpop.eup %4850 }
 0xac7   :  { %1311 = vrot.lane.b32.xlu0 %v4851_v7, %s4959_s17 }
 0xb39   :  { %v1312_v21 = vpop.permute.xlu0 %1311 }
 0xb3a   :  { %v1314_v22 = vmul.f32 %v4849_v13, %v1312_v21 }
 0xb3c   :  { %1316 = vrot.lane.b32.xlu1 %v1314_v22, %s4960_s18 }
 0xbae   :  { %v1317_v24 = vpop.permute.xlu1 %1316 }
 0xbaf   :  { %1319 = vst.msk [vmem:[#allocation2 + $0x18] sm:$0xff] %vm26_vm0, %v1317_v24  ;;  %4162 = vmatmul.mubr.msk.f32.vlgmr.msra.gmra.mrb[20].mxu1 %vm903_vm3, %v1317_v24 }
 0xbb0   :  { %1320 = vst.msk [vmem:[#allocation2 + $0x20] sm:$0xff] %vm1007_vm2, %v1317_v24  ;;  %4527 = vmatpush3.bf16.msra.mxu1 %v5114_v12  ;;  %4172 = vmatprep.mubr.msk.f32.mxu1 %vm4958_vm1, %v4956_v3 }
 0xbb1   :  { %4528 = vmatprep.subr.bf16.mxu1 %v4957_v5 }
 0xbb4   :  { %4530 = vmatpush3.bf16.msra.mxu1 %v5156_v41 }
 0xbb5   :  { %4531 = vmatprep.subr.bf16.mxu1 %v4957_v5 }
 0xc82   :  { %v1390_v26 = vpop.f32.mrb[20].mxu1 }
 0xc83   :  { %v1394_v27 = vadd.f32 %v1390_v26, %v5260_v10  ;;  %v4163_v32 = vpop.f32.mrb[21].mxu1 }
 0xc85   :  { %4852 = vtanh.f32 %v1394_v27  ;;  %v3903_v46 = vmul.f32 -1.442695, %v1394_v27 }
 0xc87   :  { %4854 = vpow2.f32 %v3903_v46  ;;  %v1738_v46 = vld [vmem:[%s5701_s2 + $0x48] sm:$0xff] }
 0xc8f   :  { %v4853_v45 = vpop.eup %4852 }
 0xc90   :  { %1404 = vrot.lane.b32.xlu0 %v4853_v45, %s4959_s17  ;;  %v1737_v45 = vld [vmem:[%s5701_s2 + $0x40] sm:$0xff] }
 0xc91   :  { %v4855_v47 = vpop.eup %4854 }
 0xc92   :  { %v1398_v48 = vadd.f32 1.0, %v4855_v47  ;;  %v1739_v47 = vld [vmem:[%s5701_s2 + $0x50] sm:$0xff] }
 0xc94   :  { %4856 = vrcp.f32 %v1398_v48  ;;  %v1779_v48 = vand.u32 4294901760, %v1737_v45 }
 0xc9e   :  { %v4857_v49 = vpop.eup %4856 }
 0xc9f   :  { %v1402_v52 = vmul.f32 %v4857_v49, %v1308_v20 }
 0xd02   :  { %v1405_v50 = vpop.permute.xlu0 %1404 }
 0xd03   :  { %v1407_v51 = vmul.f32 %v4857_v49, %v1405_v50  ;;  %v1740_v50 = vld [vmem:[%s5701_s2 + $0x58] sm:$0xff] }
 0xd05   :  { %1409 = vrot.lane.b32.xlu1 %v1407_v51, %s4960_s18  ;;  %v1785_v51 = vand.u32 4294901760, %v1739_v47 }
 0xd77   :  { %v1410_v53 = vpop.permute.xlu1 %1409 }
 0xd78   :  { %v1412_v54 = vadd.f32 %v1410_v53, %v1402_v52  ;;  %v1788_v52 = vand.u32 4294901760, %v1740_v50 }
 0xd7a   :  { %4858 = vtanh.f32 %v1412_v54 }
 0xd84   :  { %v4859_v10 = vpop.eup %4858 }
 0xd85   :  { %1415 = vrot.lane.b32.xlu0 %v4859_v10, %s4959_s17 }
 0xdf7   :  { %v1416_v55 = vpop.permute.xlu0 %1415 }
 0xdf8   :  { %v1418_v56 = vmul.f32 %v4857_v49, %v1416_v55  ;;  %v1782_v49 = vand.u32 4294901760, %v1738_v46 }
 0xdfa   :  { %1420 = vrot.lane.b32.xlu1 %v1418_v56, %s4960_s18  ;;  %v5375_v53 = vpack.c.bf16 %v1782_v49, %v1779_v48  ;;  %v1929_v56 = vsub.f32 %v1737_v45, %v1779_v48 }
 0xe6c   :  { %v1421_v57 = vpop.permute.xlu1 %1420 }
 0xe6d   :  { %1423 = vst.msk [vmem:[#allocation2 + $0x20] sm:$0xff] %vm26_vm0, %v1421_v57  ;;  %4173 = vmatmul.mubr.msk.f32.vlgmr.msra.gmra.mrb[22].mxu1 %vm903_vm3, %v1421_v57 }
 0xe6e   :  { %1424 = vst.msk [vmem:[#allocation2 + $0x18] sm:$0xff] %vm1007_vm2, %v1421_v57  ;;  %4533 = vmatpush3.bf16.msra.mxu1 %v5114_v12  ;;  %4183 = vmatprep.mubr.msk.f32.mxu1 %vm4958_vm1, %v4956_v3  ;;  %v1936_v57 = vsub.f32 %v1738_v46, %v1782_v49 }
 0xe6f   :  { %4534 = vmatprep.subr.bf16.mxu1 %v4957_v5 }
 0xe72   :  { %4536 = vmatpush3.bf16.msra.mxu1 %v5156_v41 }
 0xe73   :  { %4537 = vmatprep.subr.bf16.mxu1 %v4957_v5 }
 0xf40   :  { %v1494_v58 = vpop.f32.mrb[22].mxu1 }
 0xf41   :  { %v1498_v59 = vadd.f32 %v1494_v58, %v5264_v29  ;;  %v4174_v60 = vpop.f32.mrb[23].mxu1  ;;  %v1930_v58 = vand.u32 4294901760, %v1929_v56 }
 0xf43   :  { %4860 = vtanh.f32 %v1498_v59  ;;  %v3905_v62 = vmul.f32 -1.442695, %v1498_v59  ;;  %v1937_v59 = vand.u32 4294901760, %v1936_v57  ;;  %v1931_v60 = vsub.f32 %v1929_v56, %v1930_v58 }
 0xf45   :  { %4862 = vpow2.f32 %v3905_v62  ;;  %v1943_v62 = vsub.f32 %v1739_v47, %v1785_v51 }
 0xf4d   :  { %v4861_v61 = vpop.eup %4860 }
 0xf4e   :  { %1508 = vrot.lane.b32.xlu0 %v4861_v61, %s4959_s17  ;;  %v1938_v61 = vsub.f32 %v1936_v57, %v1937_v59 }
 0xf4f   :  { %v4863_v63 = vpop.eup %4862 }
 0xf50   :  { %v1502_v0 = vadd.f32 1.0, %v4863_v63  ;;  %v1950_v63 = vsub.f32 %v1740_v50, %v1788_v52 }
 0xf52   :  { %4864 = vrcp.f32 %v1502_v0  ;;  %v1932_v0 = vand.u32 4294901760, %v1931_v60 }
 0xf5c   :  { %v4865_v1 = vpop.eup %4864 }
 0xf5d   :  { %v1506_v6 = vmul.f32 %v4865_v1, %v1412_v54  ;;  %v5377_v54 = vpack.c.bf16 %v1788_v52, %v1785_v51 }
 0xfc0   :  { %v1509_v2 = vpop.permute.xlu0 %1508 }
 0xfc1   :  { %v1511_v4 = vmul.f32 %v4865_v1, %v1509_v2  ;;  %v1944_v2 = vand.u32 4294901760, %v1943_v62 }
 0xfc3   :  { %1513 = vrot.lane.b32.xlu1 %v1511_v4, %s4960_s18  ;;  %v1951_v4 = vand.u32 4294901760, %v1950_v63 }
0x1035   :  { %v1514_v8 = vpop.permute.xlu1 %1513 }
0x1036   :  { %v1516_v9 = vadd.f32 %v1514_v8, %v1506_v6  ;;  %v1945_v8 = vsub.f32 %v1943_v62, %v1944_v2 }
0x1038   :  { %4866 = vtanh.f32 %v1516_v9 }
0x1042   :  { %v4867_v29 = vpop.eup %4866 }
0x1043   :  { %1519 = vrot.lane.b32.xlu0 %v4867_v29, %s4959_s17  ;;  %v1946_v29 = vand.u32 4294901760, %v1945_v8 }
0x10b5   :  { %v1520_v11 = vpop.permute.xlu0 %1519 }
0x10b6   :  { %v1522_v14 = vmul.f32 %v4865_v1, %v1520_v11  ;;  %v1939_v1 = vand.u32 4294901760, %v1938_v61 }
0x10b8   :  { %1524 = vrot.lane.b32.xlu1 %v1522_v14, %s4960_s18  ;;  %v5384_v6 = vpack.c.bf16 %v1939_v1, %v1932_v0 }
0x112a   :  { %v1525_v18 = vpop.permute.xlu1 %1524 }
0x112b   :  { %1527 = vst.msk [vmem:[#allocation2 + $0x28] sm:$0xff] %vm26_vm0, %v1525_v18  ;;  %4184 = vmatmul.mubr.msk.f32.vlgmr.msra.gmra.mrb[24].mxu1 %vm903_vm3, %v1525_v18 }
0x112c   :  { %1528 = vst.msk [vmem:[#allocation2 + $0x10] sm:$0xff] %vm1007_vm2, %v1525_v18  ;;  %4539 = vmatpush3.bf16.msra.mxu1 %v5114_v12  ;;  %4194 = vmatprep.mubr.msk.f32.mxu1 %vm4958_vm1, %v4956_v3  ;;  %v5389_v18 = vpack.c.bf16 %v1936_v57, %v1929_v56 }
0x112d   :  { %4540 = vmatprep.subr.bf16.mxu1 %v4957_v5 }
0x1130   :  { %4542 = vmatpush3.bf16.msra.mxu1 %v5156_v41 }
0x1131   :  { %4544 = vmatprep.subr.bf16.mxu1 %v5375_v53 }
0x11fe   :  { %v1598_v25 = vpop.f32.mrb[24].mxu1 }
0x11ff   :  { %v1602_v28 = vadd.f32 %v1598_v25, %v5266_v37  ;;  %v4185_v30 = vpop.f32.mrb[25].mxu1  ;;  %v5391_v25 = vpack.c.bf16 %v1950_v63, %v1943_v62 }
0x1200   :  { %v5395_v30 = vpack.c.bf16 %v1951_v4, %v1944_v2 }
0x1201   :  { %4868 = vtanh.f32 %v1602_v28  ;;  %v3907_v31 = vmul.f32 -1.442695, %v1602_v28  ;;  %v5393_v28 = vpack.c.bf16 %v1937_v59, %v1930_v58 }
0x1203   :  { %4870 = vpow2.f32 %v3907_v31  ;;  %v2565_v31 = vld [vmem:[%s5701_s2 + $0x28] sm:$0xff] }
0x120b   :  { %v4869_v23 = vpop.eup %4868 }
0x120c   :  { %1612 = vrot.lane.b32.xlu0 %v4869_v23, %s4959_s17  ;;  %v2564_v23 = vld [vmem:[%s5701_s2 + $0x20] sm:$0xff] }
0x120d   :  { %v4871_v33 = vpop.eup %4870 }
0x120e   :  { %v1606_v34 = vadd.f32 1.0, %v4871_v33  ;;  %v5403_v33 = vpack.c.bf16 %v2565_v31, %v2564_v23 }
0x1210   :  { %4872 = vrcp.f32 %v1606_v34  ;;  %4617 = vmatpush3.bf16.msra.mxu0 %v5403_v33  ;;  %v2566_v34 = vld [vmem:[%s5701_s2 + $0x30] sm:$0xff] }
0x1211   :  { %4618 = vmatprep.subr.bf16.mxu0 %v4957_v5 }
0x121a   :  { %v4873_v12 = vpop.eup %4872 }
0x121b   :  { %v1610_v38 = vmul.f32 %v4873_v12, %v1516_v9  ;;  %v1952_v9 = vsub.f32 %v1950_v63, %v1951_v4 }
0x121d   :  { %v1953_v11 = vand.u32 4294901760, %v1952_v9 }
0x121f   :  { %v5387_v14 = vpack.c.bf16 %v1953_v11, %v1946_v29 }
0x127e   :  { %v1613_v35 = vpop.permute.xlu0 %1612 }
0x127f   :  { %v1615_v36 = vmul.f32 %v4873_v12, %v1613_v35 }
0x1281   :  { %1617 = vrot.lane.b32.xlu1 %v1615_v36, %s4960_s18 }
0x12f3   :  { %v1618_v41 = vpop.permute.xlu1 %1617 }
0x12f4   :  { %v1620_v39 = vadd.f32 %v1618_v41, %v1610_v38  ;;  %v1744_v38 = vld [vmem:[#allocation2 + $0x10] sm:$0xff] }
0x12f6   :  { %4874 = vtanh.f32 %v1620_v39 }
0x1300   :  { %v4875_v37 = vpop.eup %4874 }
0x1301   :  { %1623 = vrot.lane.b32.xlu0 %v4875_v37, %s4959_s17  ;;  %v1761_v37 = vsel %vm903_vm3, %v1744_v38, 0 }
0x1373   :  { %v1624_v40 = vpop.permute.xlu0 %1623 }
0x1374   :  { %v1626_v42 = vmul.f32 %v4873_v12, %v1624_v40  ;;  %v2567_v12 = vld [vmem:[%s5701_s2 + $0x38] sm:$0xff] }
0x1375   :  { %v5413_v35 = vpack.c.bf16 %v2567_v12, %v2566_v34  ;;  %v1745_v40 = vld [vmem:[#allocation2 + $0x18] sm:$0xff] }
0x1376   :  { %1628 = vrot.lane.b32.xlu1 %v1626_v42, %s4960_s18  ;;  %v1746_v42 = vld [vmem:[#allocation2 + $0x20] sm:$0xff] }
0x1377   :  { %4620 = vmatpush3.bf16.msra.mxu0 %v5413_v35 }
0x1378   :  { %4627 = vmatprep.subr.bf16.mxu0 %v4957_v5 }
0x13e8   :  { %v1629_v44 = vpop.permute.xlu1 %1628 }
0x13e9   :  { %1631 = vst.msk [vmem:[#allocation2 + $0x30] sm:$0xff] %vm26_vm0, %v1629_v44  ;;  %4195 = vmatmul.mubr.msk.f32.vlgmr.msra.gmra.mrb[26].mxu1 %vm903_vm3, %v1629_v44 }
0x13ea   :  { %1632 = vst.msk [vmem:[#allocation2 + $0x8] sm:$0xff] %vm1007_vm2, %v1629_v44  ;;  %4546 = vmatpush3.bf16.msra.mxu1 %v5375_v53 }
0x13eb   :  { %4548 = vmatprep.subr.bf16.mxu1 %v5377_v54 }
0x13ee   :  { %4550 = vmatpush3.bf16.msra.mxu1 %v5377_v54 }
0x13ef   :  { %4552 = vmatprep.subr.bf16.mxu1 %v5384_v6 }
0x13f1   :  { %v1743_v36 = vld [vmem:[#allocation2 + $0x8] sm:$0xff] }
0x14bc   :  { %v1702_v13 = vpop.f32.mrb[26].mxu1 }
0x14bd   :  { %v1706_v15 = vadd.f32 %v1702_v13, %v5268_v43  ;;  %v4196_v16 = vpop.f32.mrb[27].mxu1  ;;  %v5423_v13 = vand.u32 4294901760, %v1761_v37 }
0x14be   :  { %v1767_v16 = vsel %vm903_vm3, %v1746_v42, 0 }
0x14bf   :  { %4876 = vtanh.f32 %v1706_v15  ;;  %v3909_v19 = vmul.f32 -1.442695, %v1706_v15  ;;  %v1764_v15 = vsel %vm903_vm3, %v1745_v40, 0 }
0x14c1   :  { %4878 = vpow2.f32 %v3909_v19  ;;  %v1748_v19 = vld [vmem:[#allocation2 + $0x30] sm:$0xff] }
0x14c9   :  { %v4877_v17 = vpop.eup %4876 }
0x14ca   :  { %1716 = vrot.lane.b32.xlu0 %v4877_v17, %s4959_s17  ;;  %v1747_v17 = vld [vmem:[#allocation2 + $0x28] sm:$0xff] }
0x14cb   :  { %v4879_v20 = vpop.eup %4878 }
0x14cc   :  { %v1710_v7 = vadd.f32 1.0, %v4879_v20 }
0x14ce   :  { %4880 = vrcp.f32 %v1710_v7  ;;  %v5430_v7 = vand.u32 4294901760, %v1764_v15 }
0x14d0   :  { %v5444_v47 = vsub.f32 %v1764_v15, %v5430_v7 }
0x14d2   :  { %v1879_v57 = vand.u32 4294901760, %v5444_v47 }
0x14d4   :  { %v1880_v2 = vsub.f32 %v5444_v47, %v1879_v57 }
0x14d6   :  { %v1881_v23 = vand.u32 4294901760, %v1880_v2 }
0x14d8   :  { %v4881_v21 = vpop.eup %4880 }
0x14d9   :  { %v1714_v26 = vmul.f32 %v4881_v21, %v1620_v39  ;;  %v1758_v39 = vsel %vm903_vm3, %v1743_v36, 0 }
0x14da   :  { %v5421_v44 = vand.u32 4294901760, %v1758_v39 }
0x14dc   :  { %v5428_v20 = vsub.f32 %v1758_v39, %v5421_v44 }
0x14de   :  { %v1859_v46 = vand.u32 4294901760, %v5428_v20 }
0x14e0   :  { %v1860_v56 = vsub.f32 %v5428_v20, %v1859_v46 }
0x14e2   :  { %v1861_v1 = vand.u32 4294901760, %v1860_v56 }
0x153c   :  { %v1717_v22 = vpop.permute.xlu0 %1716 }
0x153d   :  { %v1719_v24 = vmul.f32 %v4881_v21, %v1717_v22 }
0x153f   :  { %1721 = vrot.lane.b32.xlu1 %v1719_v24, %s4960_s18  ;;  %v5435_v24 = vsub.f32 %v1761_v37, %v5423_v13 }
0x1541   :  { %v1869_v51 = vand.u32 4294901760, %v5435_v24 }
0x1543   :  { %v1870_v61 = vsub.f32 %v5435_v24, %v1869_v51 }
0x1545   :  { %v1871_v9 = vand.u32 4294901760, %v1870_v61 }
0x15b1   :  { %v1722_v27 = vpop.permute.xlu1 %1721 }
0x15b2   :  { %v1724_v32 = vadd.f32 %v1722_v27, %v1714_v26  ;;  %v1770_v26 = vsel %vm903_vm3, %v1747_v17, 0 }
0x15b3   :  { %v5449_v49 = vand.u32 4294901760, %v1770_v26 }
0x15b4   :  { %4882 = vtanh.f32 %v1724_v32  ;;  %v1773_v32 = vsel %vm903_vm3, %v1748_v19, 0 }
0x15b5   :  { %v5455_v52 = vand.u32 4294901760, %v1773_v32  ;;  %v5464_v58 = vsub.f32 %v1770_v26, %v5449_v49 }
0x15b7   :  { %v5474_v63 = vsub.f32 %v1773_v32, %v5455_v52  ;;  %v1899_v4 = vand.u32 4294901760, %v5464_v58 }
0x15b9   :  { %v1909_v11 = vand.u32 4294901760, %v5474_v63  ;;  %v1900_v31 = vsub.f32 %v5464_v58, %v1899_v4 }
0x15bb   :  { %v1910_v36 = vsub.f32 %v5474_v63, %v1909_v11  ;;  %v1901_v38 = vand.u32 4294901760, %v1900_v31 }
0x15bd   :  { %v1911_v39 = vand.u32 4294901760, %v1910_v36 }
0x15be   :  { %v4883_v43 = vpop.eup %4882 }
0x15bf   :  { %1727 = vrot.lane.b32.xlu0 %v4883_v43, %s4959_s17 }
0x1631   :  { %v1728_v10 = vpop.permute.xlu0 %1727 }
0x1632   :  { %v1730_v55 = vmul.f32 %v4881_v21, %v1728_v10  ;;  %v5432_v21 = vand.u32 4294901760, %v1767_v16 }
0x1634   :  { %1732 = vrot.lane.b32.xlu1 %v1730_v55, %s4960_s18  ;;  %v5447_v48 = vsub.f32 %v1767_v16, %v5432_v21 }
0x1636   :  { %v1889_v62 = vand.u32 4294901760, %v5447_v48 }
0x1638   :  { %v1890_v29 = vsub.f32 %v5447_v48, %v1889_v62 }
0x163a   :  { %v1891_v12 = vand.u32 4294901760, %v1890_v29 }
0x16a6   :  { %v1733_v41 = vpop.permute.xlu1 %1732 }
0x16a7   :  { %1735 = vst.msk [vmem:[#allocation2 + $0x38] sm:$0xff] %vm26_vm0, %v1733_v41 }
0x16a8   :  { %1736 = vst.msk [vmem:[#allocation2] sm:$0xff] %vm1007_vm2, %v1733_v41 }
0x16ae   :  { %v1749_v43 = vld [vmem:[#allocation2 + $0x38] sm:$0xff] }
0x16af   :  { %v1742_v22 = vld [vmem:[#allocation2] sm:$0xff]  ;;  %v1776_v10 = vsel %vm903_vm3, %v1749_v43, 0 }
0x16b0   :  { %v1755_v27 = vsel %vm903_vm3, %v1742_v22, 0  ;;  %v5466_v59 = vand.u32 4294901760, %v1776_v10 }
0x16b1   :  { %v5440_v45 = vand.u32 4294901760, %v1755_v27 }
0x16b2   :  { %v1918_v8 = vsub.f32 %v1776_v10, %v5466_v59 }
0x16b3   :  { %v5452_v50 = vsub.f32 %v1755_v27, %v5440_v45 }
0x16b4   :  { %v1919_v34 = vand.u32 4294901760, %v1918_v8 }
0x16b5   :  { %v1849_v55 = vand.u32 4294901760, %v5452_v50 }
0x16b6   :  { %v1920_v41 = vsub.f32 %v1918_v8, %v1919_v34 }
0x16b7   :  { %v1850_v60 = vsub.f32 %v5452_v50, %v1849_v55 }
0x16b9   :  { %v1851_v0 = vand.u32 4294901760, %v1850_v60 }
0x16bb   :  { %4205 = vmatprep.mubr.f32.mxu1 %v1851_v0 }
0x16bc   :  { %4206 = vmatmul.mubr.f32.vlgmr.msra.gmra.mrb[28].mxu1 %v1861_v1 }
0x16bd   :  { %4208 = vmatprep.mubr.f32.mxu1 %v1871_v9  ;;  %4554 = vmatpush3.bf16.msra.mxu1 %v5384_v6  ;;  %v1921_v6 = vand.u32 4294901760, %v1920_v41 }
0x16be   :  { %4556 = vmatprep.subr.bf16.mxu1 %v5387_v14 }
0x16c0   :  { %4209 = vmatmul.mubr.f32.gmra.mrb[30].mxu1 %v1881_v23 }
0x16c1   :  { %4211 = vmatprep.mubr.f32.mxu1 %v1891_v12  ;;  %4558 = vmatpush3.bf16.msra.mxu1 %v5387_v14 }
0x16c2   :  { %4560 = vmatprep.subr.bf16.mxu1 %v5389_v18 }
0x16c4   :  { %4212 = vmatmul.mubr.f32.gmra.mrb[32].mxu1 %v1901_v38 }
0x16c5   :  { %4214 = vmatprep.mubr.f32.mxu1 %v1911_v39 }
0x16c8   :  { %4215 = vmatmul.mubr.f32.gmra.mrb[34].mxu1 %v1921_v6 }
0x16c9   :  { %4225 = vmatprep.mubr.f32.mxu1 %v5440_v45 }
0x16cc   :  { %4226 = vmatmul.mubr.f32.vlgmr.msra.gmra.mrb[28].mxu1 %v5421_v44 }
0x16cd   :  { %4228 = vmatprep.mubr.f32.mxu1 %v5423_v13  ;;  %4562 = vmatpush3.bf16.msra.mxu1 %v5389_v18 }
0x16ce   :  { %4564 = vmatprep.subr.bf16.mxu1 %v5391_v25 }
0x16d0   :  { %4229 = vmatmul.mubr.f32.gmra.mrb[30].mxu1 %v5430_v7 }
0x16d1   :  { %4231 = vmatprep.mubr.f32.mxu1 %v5432_v21  ;;  %4566 = vmatpush3.bf16.msra.mxu1 %v5391_v25 }
0x16d2   :  { %4568 = vmatprep.subr.bf16.mxu1 %v5375_v53 }
0x16d4   :  { %4232 = vmatmul.mubr.f32.gmra.mrb[32].mxu1 %v5449_v49 }
0x16d5   :  { %4234 = vmatprep.mubr.f32.mxu1 %v5455_v52 }
0x16d8   :  { %4235 = vmatmul.mubr.f32.gmra.mrb[34].mxu1 %v5466_v59 }
0x16d9   :  { %4245 = vmatprep.mubr.f32.mxu1 %v5452_v50 }
0x16dc   :  { %4246 = vmatmul.mubr.f32.vlgmr.msra.gmra.mrb[28].mxu1 %v5428_v20 }
0x16dd   :  { %4248 = vmatprep.mubr.f32.mxu1 %v5435_v24  ;;  %4570 = vmatpush3.bf16.msra.mxu1 %v5375_v53 }
0x16de   :  { %4572 = vmatprep.subr.bf16.mxu1 %v5377_v54 }
0x16e0   :  { %4249 = vmatmul.mubr.f32.gmra.mrb[30].mxu1 %v5444_v47 }
0x16e1   :  { %4251 = vmatprep.mubr.f32.mxu1 %v5447_v48  ;;  %4574 = vmatpush3.bf16.msra.mxu1 %v5377_v54 }
0x16e2   :  { %4576 = vmatprep.subr.bf16.mxu1 %v5393_v28 }
0x16e4   :  { %4252 = vmatmul.mubr.f32.gmra.mrb[32].mxu1 %v5464_v58 }
0x16e5   :  { %4254 = vmatprep.mubr.f32.mxu1 %v5474_v63 }
0x16e8   :  { %4255 = vmatmul.mubr.f32.gmra.mrb[34].mxu1 %v1918_v8 }
0x16e9   :  { %4265 = vmatprep.mubr.f32.mxu1 %v1849_v55 }
0x16ec   :  { %4266 = vmatmul.mubr.f32.vlgmr.msra.gmra.mrb[28].mxu1 %v1859_v46 }
0x16ed   :  { %4268 = vmatprep.mubr.f32.mxu1 %v1869_v51  ;;  %4578 = vmatpush3.bf16.msra.mxu1 %v5393_v28 }
0x16ee   :  { %4580 = vmatprep.subr.bf16.mxu1 %v5395_v30 }
0x16f0   :  { %4269 = vmatmul.mubr.f32.gmra.mrb[30].mxu1 %v1879_v57 }
0x16f1   :  { %4271 = vmatprep.mubr.f32.mxu1 %v1889_v62  ;;  %4582 = vmatpush3.bf16.msra.mxu1 %v5395_v30 }
0x16f2   :  { %4584 = vmatprep.subr.bf16.mxu1 %v5375_v53 }
0x16f4   :  { %4272 = vmatmul.mubr.f32.gmra.mrb[32].mxu1 %v1899_v4 }
0x16f5   :  { %4274 = vmatprep.mubr.f32.mxu1 %v1909_v11 }
0x16f8   :  { %4275 = vmatmul.mubr.f32.gmra.mrb[34].mxu1 %v1919_v34 }
0x16f9   :  { %4285 = vmatprep.mubr.f32.mxu1 %v5440_v45 }
0x16fc   :  { %4286 = vmatmul.mubr.f32.vlgmr.msra.gmra.mrb[28].mxu1 %v5421_v44 }
0x16fd   :  { %4288 = vmatprep.mubr.f32.mxu1 %v5423_v13  ;;  %4586 = vmatpush3.bf16.msra.mxu1 %v5375_v53  ;;  %v3910_v53 = vld [vmem:[%s5701_s2 + $0x81] ss:$0 sm:$0xff] }
0x16fe   :  { %4588 = vmatprep.subr.bf16.mxu1 %v5377_v54 }
0x1700   :  { %4289 = vmatmul.mubr.f32.gmra.mrb[30].mxu1 %v5430_v7 }
0x1701   :  { %4291 = vmatprep.mubr.f32.mxu1 %v5432_v21  ;;  %4590 = vmatpush3.bf16.msra.mxu1 %v5377_v54 }
0x1702   :  { %4591 = vmatprep.subr.bf16.mxu1 %v4957_v5 }
0x1704   :  { %4292 = vmatmul.mubr.f32.gmra.mrb[32].mxu1 %v5449_v49 }
0x1705   :  { %4294 = vmatprep.mubr.f32.mxu1 %v5455_v52 }
0x1708   :  { %4295 = vmatmul.mubr.f32.gmra.mrb[34].mxu1 %v5466_v59 }
0x1709   :  { %4305 = vmatprep.mubr.f32.mxu1 %v5440_v45 }
0x170c   :  { %4306 = vmatmul.mubr.f32.vlgmr.msra.gmra.mrb[28].mxu1 %v5421_v44 }
0x170d   :  { %4308 = vmatprep.mubr.f32.mxu1 %v5423_v13  ;;  %4593 = vmatpush3.bf16.msra.mxu1 %v5403_v33 }
0x170e   :  { %4594 = vmatprep.subr.bf16.mxu1 %v4957_v5 }
0x1710   :  { %4309 = vmatmul.mubr.f32.gmra.mrb[30].mxu1 %v5430_v7 }
0x1711   :  { %4311 = vmatprep.mubr.f32.mxu1 %v5432_v21  ;;  %4596 = vmatpush3.bf16.msra.mxu1 %v5413_v35 }
0x1712   :  { %4597 = vmatprep.subr.bf16.mxu1 %v4957_v5 }
0x1714   :  { %4312 = vmatmul.mubr.f32.gmra.mrb[32].mxu1 %v5449_v49 }
0x1715   :  { %4314 = vmatprep.mubr.f32.mxu1 %v5455_v52 }
0x1718   :  { %4315 = vmatmul.mubr.f32.gmra.mrb[34].mxu1 %v5466_v59 }
0x1719   :  { %4325 = vmatprep.mubr.msk.f32.mxu1 %vm4958_vm1, %v4956_v3 }
0x171c   :  { %4326 = vmatmul.mubr.f32.vlgmr.msra.gmra.mrb[36].mxu1 %v4956_v3 }
0x171d   :  { %4599 = vmatpush3.bf16.msra.mxu1 %v5403_v33  ;;  %4336 = vmatprep.mubr.msk.f32.mxu1 %vm4958_vm1, %v4956_v3 }
0x171e   :  { %4600 = vmatprep.subr.bf16.mxu1 %v4957_v5 }
0x1721   :  { %4602 = vmatpush3.bf16.msra.mxu1 %v5413_v35 }
0x1722   :  { %4603 = vmatprep.subr.bf16.mxu1 %v4957_v5 }
0x17df   :  { %v4307_v54 = vpop.f32.mrb[28].mxu1 }
0x17e0   :  { %v4689_v14 = vadd.f32 %v4307_v54, %v3910_v53  ;;  %v2518_v18 = vpop.f32.mrb[29].mxu1 }
0x17e1   :  { %v4690_v20 = vadd.f32 %v3910_v53, %v2518_v18 }
0x17e3   :  { %v4310_v25 = vpop.f32.mrb[30].mxu1 }
0x17e4   :  { %v5558_v28 = vadd.f32 %v4310_v25, %v3910_v53  ;;  %v2530_v30 = vpop.f32.mrb[31].mxu1 }
0x17e5   :  { %v5560_v37 = vadd.f32 %v3910_v53, %v2530_v30 }
0x17e7   :  { %v4313_v40 = vpop.f32.mrb[32].mxu1 }
0x17e8   :  { %v5562_v42 = vadd.f32 %v4313_v40, %v3910_v53  ;;  %v2542_v44 = vpop.f32.mrb[33].mxu1 }
0x17e9   :  { %v5564_v13 = vadd.f32 %v3910_v53, %v2542_v44 }
0x17eb   :  { %v4316_v15 = vpop.f32.mrb[34].mxu1 }
0x17ec   :  { %v5566_v16 = vadd.f32 %v4316_v15, %v3910_v53  ;;  %v2554_v17 = vpop.f32.mrb[35].mxu1 }
0x17ed   :  { %v5568_v19 = vadd.f32 %v3910_v53, %v2554_v17 }
0x17ef   :  { %v2634_v7 = vpop.f32.mrb[36].mxu1 }
0x17f0   :  { %v2638_v21 = vadd.f32 %v4690_v20, %v2634_v7  ;;  %v4327_v22 = vpop.f32.mrb[37].mxu1 }
0x17f2   :  { %4884 = vtanh.f32 %v2638_v21  ;;  %v3911_v26 = vmul.f32 -1.442695, %v2638_v21 }
0x17f4   :  { %4886 = vpow2.f32 %v3911_v26 }
0x17fc   :  { %v4885_v24 = vpop.eup %4884 }
0x17fd   :  { %2648 = vrot.lane.b32.xlu0 %v4885_v24, %s4959_s17 }
0x17fe   :  { %v4887_v27 = vpop.eup %4886 }
0x17ff   :  { %v2642_v32 = vadd.f32 1.0, %v4887_v27 }
0x1801   :  { %4888 = vrcp.f32 %v2642_v32 }
0x180b   :  { %v4889_v43 = vpop.eup %4888 }
0x180c   :  { %v2646_v47 = vmul.f32 0.0, %v4889_v43 }
0x186f   :  { %v2649_v45 = vpop.permute.xlu0 %2648 }
0x1870   :  { %v2651_v46 = vmul.f32 %v4889_v43, %v2649_v45 }
0x1872   :  { %2653 = vrot.lane.b32.xlu1 %v2651_v46, %s4960_s18 }
0x18e4   :  { %v2654_v48 = vpop.permute.xlu1 %2653 }
0x18e5   :  { %v2656_v49 = vadd.f32 %v2654_v48, %v2646_v47 }
0x18e7   :  { %4890 = vtanh.f32 %v2656_v49 }
0x18f1   :  { %v4891_v50 = vpop.eup %4890 }
0x18f2   :  { %2659 = vrot.lane.b32.xlu0 %v4891_v50, %s4959_s17 }
0x1964   :  { %v2660_v51 = vpop.permute.xlu0 %2659 }
0x1965   :  { %v2662_v52 = vmul.f32 %v4889_v43, %v2660_v51 }
0x1967   :  { %2664 = vrot.lane.b32.xlu1 %v2662_v52, %s4960_s18 }
0x19d9   :  { %v2665_v10 = vpop.permute.xlu1 %2664 }
0x19da   :  { %4337 = vmatmul.mubr.msk.f32.vlgmr.msra.gmra.mrb[38].mxu1 %vm903_vm3, %v2665_v10 }
0x19db   :  { %4605 = vmatpush3.bf16.msra.mxu1 %v5403_v33  ;;  %4347 = vmatprep.mubr.msk.f32.mxu1 %vm4958_vm1, %v4956_v3 }
0x19dc   :  { %4606 = vmatprep.subr.bf16.mxu1 %v4957_v5 }
0x19df   :  { %4608 = vmatpush3.bf16.msra.mxu1 %v5413_v35 }
0x19e0   :  { %4609 = vmatprep.subr.bf16.mxu1 %v4957_v5 }
0x1aad   :  { %v2734_v55 = vpop.f32.mrb[38].mxu1 }
0x1aae   :  { %v2738_v56 = vadd.f32 %v4689_v14, %v2734_v55  ;;  %v4338_v57 = vpop.f32.mrb[39].mxu1 }
0x1ab0   :  { %4892 = vtanh.f32 %v2738_v56  ;;  %v3913_v59 = vmul.f32 -1.442695, %v2738_v56 }
0x1ab2   :  { %4894 = vpow2.f32 %v3913_v59 }
0x1aba   :  { %v4893_v58 = vpop.eup %4892 }
0x1abb   :  { %2748 = vrot.lane.b32.xlu0 %v4893_v58, %s4959_s17 }
0x1abc   :  { %v4895_v60 = vpop.eup %4894 }
0x1abd   :  { %v2742_v61 = vadd.f32 1.0, %v4895_v60 }
0x1abf   :  { %4896 = vrcp.f32 %v2742_v61 }
0x1ac9   :  { %v4897_v62 = vpop.eup %4896 }
0x1aca   :  { %v2746_v1 = vmul.f32 %v4897_v62, %v2656_v49 }
0x1b2d   :  { %v2749_v63 = vpop.permute.xlu0 %2748 }
0x1b2e   :  { %v2751_v0 = vmul.f32 %v4897_v62, %v2749_v63 }
0x1b30   :  { %2753 = vrot.lane.b32.xlu1 %v2751_v0, %s4960_s18 }
0x1ba2   :  { %v2754_v2 = vpop.permute.xlu1 %2753 }
0x1ba3   :  { %v2756_v4 = vadd.f32 %v2754_v2, %v2746_v1 }
0x1ba5   :  { %4898 = vtanh.f32 %v2756_v4 }
0x1baf   :  { %v4899_v8 = vpop.eup %4898 }
0x1bb0   :  { %2759 = vrot.lane.b32.xlu0 %v4899_v8, %s4959_s17 }
0x1c22   :  { %v2760_v9 = vpop.permute.xlu0 %2759 }
0x1c23   :  { %v2762_v29 = vmul.f32 %v4897_v62, %v2760_v9 }
0x1c25   :  { %2764 = vrot.lane.b32.xlu1 %v2762_v29, %s4960_s18 }
0x1c97   :  { %v2765_v11 = vpop.permute.xlu1 %2764 }
0x1c98   :  { %4348 = vmatmul.mubr.msk.f32.vlgmr.msra.gmra.mrb[40].mxu1 %vm903_vm3, %v2765_v11 }
0x1c99   :  { %4611 = vmatpush3.bf16.msra.mxu1 %v5403_v33  ;;  %4358 = vmatprep.mubr.msk.f32.mxu1 %vm4958_vm1, %v4956_v3 }
0x1c9a   :  { %4612 = vmatprep.subr.bf16.mxu1 %v4957_v5 }
0x1c9d   :  { %4614 = vmatpush3.bf16.msra.mxu1 %v5413_v35 }
0x1c9e   :  { %4621 = vmatprep.subr.bf16.mxu1 %v4957_v5 }
0x1d6b   :  { %v2834_v23 = vpop.f32.mrb[40].mxu1 }
0x1d6c   :  { %v2838_v31 = vadd.f32 %v5560_v37, %v2834_v23  ;;  %v4349_v34 = vpop.f32.mrb[41].mxu1 }
0x1d6e   :  { %4900 = vtanh.f32 %v2838_v31  ;;  %v3915_v36 = vmul.f32 -1.442695, %v2838_v31 }
0x1d70   :  { %4902 = vpow2.f32 %v3915_v36 }
0x1d78   :  { %v4901_v12 = vpop.eup %4900 }
0x1d79   :  { %2848 = vrot.lane.b32.xlu0 %v4901_v12, %s4959_s17 }
0x1d7a   :  { %v4903_v38 = vpop.eup %4902 }
0x1d7b   :  { %v2842_v41 = vadd.f32 1.0, %v4903_v38 }
0x1d7d   :  { %4904 = vrcp.f32 %v2842_v41 }
0x1d87   :  { %v4905_v39 = vpop.eup %4904 }
0x1d88   :  { %v2846_v54 = vmul.f32 %v4905_v39, %v2756_v4 }
0x1deb   :  { %v2849_v6 = vpop.permute.xlu0 %2848 }
0x1dec   :  { %v2851_v53 = vmul.f32 %v4905_v39, %v2849_v6 }
0x1dee   :  { %2853 = vrot.lane.b32.xlu1 %v2851_v53, %s4960_s18 }
0x1e60   :  { %v2854_v14 = vpop.permute.xlu1 %2853 }
0x1e61   :  { %v2856_v18 = vadd.f32 %v2854_v14, %v2846_v54 }
0x1e63   :  { %4906 = vtanh.f32 %v2856_v18 }
0x1e6d   :  { %v4907_v25 = vpop.eup %4906 }
0x1e6e   :  { %2859 = vrot.lane.b32.xlu0 %v4907_v25, %s4959_s17 }
0x1ee0   :  { %v2860_v30 = vpop.permute.xlu0 %2859 }
0x1ee1   :  { %v2862_v37 = vmul.f32 %v4905_v39, %v2860_v30 }
0x1ee3   :  { %2864 = vrot.lane.b32.xlu1 %v2862_v37, %s4960_s18 }
0x1f55   :  { %v2865_v40 = vpop.permute.xlu1 %2864 }
0x1f56   :  { %4359 = vmatmul.mubr.msk.f32.vlgmr.msra.gmra.mrb[42].mxu1 %vm903_vm3, %v2865_v40 }
0x1f57   :  { %4623 = vmatpush3.bf16.msra.mxu1 %v5403_v33  ;;  %4380 = vmatprep.mubr.msk.f32.mxu1 %vm4958_vm1, %v4956_v3 }
0x1f58   :  { %4624 = vmatprep.subr.bf16.mxu1 %v4957_v5 }
0x1f5b   :  { %4626 = vmatpush3.bf16.msra.mxu1 %v5413_v35 }
0x1f5c   :  { %4633 = vmatprep.subr.bf16.mxu1 %v4957_v5 }
0x2029   :  { %v2934_v44 = vpop.f32.mrb[42].mxu1 }
0x202a   :  { %v2938_v15 = vadd.f32 %v5558_v28, %v2934_v44  ;;  %v4360_v17 = vpop.f32.mrb[43].mxu1 }
0x202c   :  { %4908 = vtanh.f32 %v2938_v15  ;;  %v3917_v7 = vmul.f32 -1.442695, %v2938_v15 }
0x202e   :  { %4910 = vpow2.f32 %v3917_v7 }
0x2036   :  { %v4909_v20 = vpop.eup %4908 }
0x2037   :  { %2948 = vrot.lane.b32.xlu0 %v4909_v20, %s4959_s17 }
0x2038   :  { %v4911_v21 = vpop.eup %4910 }
0x2039   :  { %v2942_v22 = vadd.f32 1.0, %v4911_v21 }
0x203b   :  { %4912 = vrcp.f32 %v2942_v22 }
0x2045   :  { %v4913_v24 = vpop.eup %4912 }
0x2046   :  { %v2946_v32 = vmul.f32 %v4913_v24, %v2856_v18 }
0x20a9   :  { %v2949_v26 = vpop.permute.xlu0 %2948 }
0x20aa   :  { %v2951_v27 = vmul.f32 %v4913_v24, %v2949_v26 }
0x20ac   :  { %2953 = vrot.lane.b32.xlu1 %v2951_v27, %s4960_s18 }
0x211e   :  { %v2954_v43 = vpop.permute.xlu1 %2953 }
0x211f   :  { %v2956_v45 = vadd.f32 %v2954_v43, %v2946_v32 }
0x2121   :  { %4914 = vtanh.f32 %v2956_v45 }
0x212b   :  { %v4915_v28 = vpop.eup %4914 }
0x212c   :  { %2959 = vrot.lane.b32.xlu0 %v4915_v28, %s4959_s17 }
0x219e   :  { %v2960_v46 = vpop.permute.xlu0 %2959 }
0x219f   :  { %v2962_v47 = vmul.f32 %v4913_v24, %v2960_v46 }
0x21a1   :  { %2964 = vrot.lane.b32.xlu1 %v2962_v47, %s4960_s18 }
0x2213   :  { %v2965_v48 = vpop.permute.xlu1 %2964 }
0x2214   :  { %4370 = vmatmul.mubr.msk.f32.vlgmr.msra.gmra.mrb[16].mxu0 %vm903_vm3, %v2965_v48 }
0x2215   :  { %4629 = vmatpush3.bf16.msra.mxu0 %v5403_v33  ;;  %4391 = vmatprep.mubr.msk.f32.mxu0 %vm4958_vm1, %v4956_v3 }
0x2216   :  { %4630 = vmatprep.subr.bf16.mxu0 %v4957_v5 }
0x2219   :  { %4632 = vmatpush3.bf16.msra.mxu0 %v5413_v35 }
0x221a   :  { %4639 = vmatprep.subr.bf16.mxu0 %v4957_v5 }
0x22e7   :  { %v3034_v49 = vpop.f32.mrb[16].mxu0 }
0x22e8   :  { %v3038_v50 = vadd.f32 %v5564_v13, %v3034_v49  ;;  %v4371_v51 = vpop.f32.mrb[17].mxu0 }
0x22ea   :  { %4916 = vtanh.f32 %v3038_v50  ;;  %v3919_v10 = vmul.f32 -1.442695, %v3038_v50 }
0x22ec   :  { %4918 = vpow2.f32 %v3919_v10 }
0x22f4   :  { %v4917_v52 = vpop.eup %4916 }
0x22f5   :  { %3048 = vrot.lane.b32.xlu0 %v4917_v52, %s4959_s17 }
0x22f6   :  { %v4919_v55 = vpop.eup %4918 }
0x22f7   :  { %v3042_v56 = vadd.f32 1.0, %v4919_v55 }
0x22f9   :  { %4920 = vrcp.f32 %v3042_v56 }
0x2303   :  { %v4921_v57 = vpop.eup %4920 }
0x2304   :  { %v3046_v60 = vmul.f32 %v4921_v57, %v2956_v45 }
0x2367   :  { %v3049_v58 = vpop.permute.xlu0 %3048 }
0x2368   :  { %v3051_v59 = vmul.f32 %v4921_v57, %v3049_v58 }
0x236a   :  { %3053 = vrot.lane.b32.xlu1 %v3051_v59, %s4960_s18 }
0x23dc   :  { %v3054_v61 = vpop.permute.xlu1 %3053 }
0x23dd   :  { %v3056_v62 = vadd.f32 %v3054_v61, %v3046_v60 }
0x23df   :  { %4922 = vtanh.f32 %v3056_v62 }
0x23e9   :  { %v4923_v13 = vpop.eup %4922 }
0x23ea   :  { %3059 = vrot.lane.b32.xlu0 %v4923_v13, %s4959_s17 }
0x245c   :  { %v3060_v63 = vpop.permute.xlu0 %3059 }
0x245d   :  { %v3062_v0 = vmul.f32 %v4921_v57, %v3060_v63 }
0x245f   :  { %3064 = vrot.lane.b32.xlu1 %v3062_v0, %s4960_s18  ;;  %v3381_v0 = vld [vmem:[%s5701_s2 + $0x60] sm:$0xff] }
0x24d1   :  { %v3065_v1 = vpop.permute.xlu1 %3064 }
0x24d2   :  { %4381 = vmatmul.mubr.msk.f32.vlgmr.msra.gmra.mrb[44].mxu1 %vm903_vm3, %v3065_v1  ;;  %v3382_v1 = vld [vmem:[%s5701_s2 + $0x68] sm:$0xff] }
0x24d3   :  { %4635 = vmatpush3.bf16.msra.mxu1 %v5403_v33  ;;  %4402 = vmatprep.mubr.msk.f32.mxu1 %vm4958_vm1, %v4956_v3 }
0x24d4   :  { %4636 = vmatprep.subr.bf16.mxu1 %v4957_v5 }
0x24d7   :  { %4638 = vmatpush3.bf16.msra.mxu1 %v5413_v35 }
0x25a5   :  { %v3134_v2 = vpop.f32.mrb[44].mxu1 }
0x25a6   :  { %v3138_v4 = vadd.f32 %v5562_v42, %v3134_v2  ;;  %v4382_v8 = vpop.f32.mrb[45].mxu1  ;;  %v3391_v2 = vand.u32 4294901760, %v3381_v0 }
0x25a8   :  { %4924 = vtanh.f32 %v3138_v4  ;;  %v3921_v29 = vmul.f32 -1.442695, %v3138_v4  ;;  %v3394_v4 = vand.u32 4294901760, %v3382_v1 }
0x25aa   :  { %4926 = vpow2.f32 %v3921_v29  ;;  %v5657_v8 = vpack.c.bf16 %v3394_v4, %v3391_v2  ;;  %v3478_v29 = vsub.f32 %v3382_v1, %v3394_v4 }
0x25b2   :  { %v4925_v9 = vpop.eup %4924 }
0x25b3   :  { %3148 = vrot.lane.b32.xlu0 %v4925_v9, %s4959_s17  ;;  %v3471_v9 = vsub.f32 %v3381_v0, %v3391_v2 }
0x25b4   :  { %v4927_v11 = vpop.eup %4926 }
0x25b5   :  { %v3142_v23 = vadd.f32 1.0, %v4927_v11  ;;  %v3383_v11 = vld [vmem:[%s5701_s2 + $0x70] sm:$0xff] }
0x25b7   :  { %4928 = vrcp.f32 %v3142_v23  ;;  %v3384_v23 = vld [vmem:[%s5701_s2 + $0x78] sm:$0xff] }
0x25c1   :  { %v4929_v33 = vpop.eup %4928 }
0x25c2   :  { %v3146_v12 = vmul.f32 %v4929_v33, %v3056_v62 }
0x2625   :  { %v3149_v31 = vpop.permute.xlu0 %3148 }
0x2626   :  { %v3151_v34 = vmul.f32 %v4929_v33, %v3149_v31  ;;  %v3400_v31 = vand.u32 4294901760, %v3384_v23 }
0x2628   :  { %3153 = vrot.lane.b32.xlu1 %v3151_v34, %s4960_s18  ;;  %v3472_v34 = vand.u32 4294901760, %v3471_v9 }
0x269a   :  { %v3154_v35 = vpop.permute.xlu1 %3153 }
0x269b   :  { %v3156_v36 = vadd.f32 %v3154_v35, %v3146_v12  ;;  %v3479_v12 = vand.u32 4294901760, %v3478_v29 }
0x269d   :  { %4930 = vtanh.f32 %v3156_v36 }
0x26a7   :  { %v4931_v42 = vpop.eup %4930 }
0x26a8   :  { %3159 = vrot.lane.b32.xlu0 %v4931_v42, %s4959_s17  ;;  %v3492_v42 = vsub.f32 %v3384_v23, %v3400_v31 }
0x271a   :  { %v3160_v38 = vpop.permute.xlu0 %3159 }
0x271b   :  { %v3162_v41 = vmul.f32 %v4929_v33, %v3160_v38  ;;  %v3397_v33 = vand.u32 4294901760, %v3383_v11  ;;  %v3473_v38 = vsub.f32 %v3471_v9, %v3472_v34 }
0x271d   :  { %3164 = vrot.lane.b32.xlu1 %v3162_v41, %s4960_s18  ;;  %v4643_v35 = vpack.c.bf16 %v3400_v31, %v3397_v33  ;;  %v3480_v41 = vsub.f32 %v3478_v29, %v3479_v12 }
0x278f   :  { %v3165_v39 = vpop.permute.xlu1 %3164 }
0x2790   :  { %4392 = vmatmul.mubr.msk.f32.vlgmr.msra.gmra.mrb[18].mxu0 %vm903_vm3, %v3165_v39  ;;  %v3474_v39 = vand.u32 4294901760, %v3473_v38 }
0x2791   :  { %4413 = vmatprep.mubr.msk.f32.mxu0 %vm4958_vm1, %v4956_v3  ;;  %4641 = vmatpush3.bf16.msra.mxu0 %v5657_v8 }
0x2792   :  { %4642 = vmatprep.subr.bf16.mxu0 %v4957_v5 }
0x2795   :  { %4644 = vmatpush3.bf16.msra.mxu0 %v4643_v35 }
0x2796   :  { %4645 = vmatprep.subr.bf16.mxu0 %v4957_v5 }
0x2863   :  { %v3234_v6 = vpop.f32.mrb[18].mxu0 }
0x2864   :  { %v3238_v53 = vadd.f32 %v5568_v19, %v3234_v6  ;;  %v4393_v54 = vpop.f32.mrb[19].mxu0 }
0x2865   :  { %v3481_v54 = vand.u32 4294901760, %v3480_v41 }
0x2866   :  { %4932 = vtanh.f32 %v3238_v53  ;;  %v3923_v18 = vmul.f32 -1.442695, %v3238_v53  ;;  %v3493_v53 = vand.u32 4294901760, %v3492_v42 }
0x2868   :  { %4934 = vpow2.f32 %v3923_v18 }
0x2870   :  { %v4933_v14 = vpop.eup %4932 }
0x2871   :  { %3248 = vrot.lane.b32.xlu0 %v4933_v14, %s4959_s17 }
0x2872   :  { %v4935_v25 = vpop.eup %4934 }
0x2873   :  { %v3242_v30 = vadd.f32 1.0, %v4935_v25  ;;  %v3494_v25 = vsub.f32 %v3492_v42, %v3493_v53 }
0x2875   :  { %4936 = vrcp.f32 %v3242_v30 }
0x287f   :  { %v4937_v37 = vpop.eup %4936 }
0x2880   :  { %v3246_v15 = vmul.f32 %v4937_v37, %v3156_v36  ;;  %v3485_v36 = vsub.f32 %v3383_v11, %v3397_v33 }
0x2882   :  { %v3486_v6 = vand.u32 4294901760, %v3485_v36 }
0x2884   :  { %v3487_v18 = vsub.f32 %v3485_v36, %v3486_v6 }
0x28e3   :  { %v3249_v40 = vpop.permute.xlu0 %3248 }
0x28e4   :  { %v3251_v44 = vmul.f32 %v4937_v37, %v3249_v40  ;;  %v3488_v40 = vand.u32 4294901760, %v3487_v18 }
0x28e6   :  { %3253 = vrot.lane.b32.xlu1 %v3251_v44, %s4960_s18  ;;  %v3495_v44 = vand.u32 4294901760, %v3494_v25 }
0x2958   :  { %v3254_v17 = vpop.permute.xlu1 %3253 }
0x2959   :  { %v3256_v20 = vadd.f32 %v3254_v17, %v3246_v15  ;;  %v4649_v15 = vpack.c.bf16 %v3495_v44, %v3488_v40  ;;  %v4652_v17 = vpack.c.bf16 %v3478_v29, %v3471_v9 }
0x295b   :  { %4938 = vtanh.f32 %v3256_v20 }
0x2965   :  { %v4939_v19 = vpop.eup %4938 }
0x2966   :  { %3259 = vrot.lane.b32.xlu0 %v4939_v19, %s4959_s17  ;;  %v4664_v19 = vpack.c.bf16 %v3479_v12, %v3472_v34 }
0x29d8   :  { %v3260_v7 = vpop.permute.xlu0 %3259 }
0x29d9   :  { %v3262_v21 = vmul.f32 %v4937_v37, %v3260_v7  ;;  %v4646_v37 = vpack.c.bf16 %v3481_v54, %v3474_v39  ;;  %v4667_v7 = vpack.c.bf16 %v3493_v53, %v3486_v6 }
0x29db   :  { %3264 = vrot.lane.b32.xlu1 %v3262_v21, %s4960_s18 }
0x2a4d   :  { %v3265_v22 = vpop.permute.xlu1 %3264 }
0x2a4e   :  { %4403 = vmatmul.mubr.msk.f32.vlgmr.msra.gmra.mrb[46].mxu1 %vm903_vm3, %v3265_v22 }
0x2b21   :  { %v3334_v24 = vpop.f32.mrb[46].mxu1 }
0x2b22   :  { %v3338_v26 = vadd.f32 %v5566_v16, %v3334_v24  ;;  %v4404_v27 = vpop.f32.mrb[47].mxu1 }
0x2b24   :  { %4940 = vtanh.f32 %v3338_v26  ;;  %v3925_v43 = vmul.f32 -1.442695, %v3338_v26 }
0x2b26   :  { %4942 = vpow2.f32 %v3925_v43 }
0x2b2e   :  { %v4941_v32 = vpop.eup %4940 }
0x2b2f   :  { %3348 = vrot.lane.b32.xlu0 %v4941_v32, %s4959_s17 }
0x2b30   :  { %v4943_v45 = vpop.eup %4942 }
0x2b31   :  { %v3342_v28 = vadd.f32 1.0, %v4943_v45 }
0x2b33   :  { %4944 = vrcp.f32 %v3342_v28 }
0x2b3d   :  { %v4945_v46 = vpop.eup %4944 }
0x2b3e   :  { %v3346_v49 = vmul.f32 %v4945_v46, %v3256_v20  ;;  %v4655_v20 = vpack.c.bf16 %v3492_v42, %v3485_v36 }
0x2ba1   :  { %v3349_v47 = vpop.permute.xlu0 %3348 }
0x2ba2   :  { %v3351_v48 = vmul.f32 %v4945_v46, %v3349_v47 }
0x2ba4   :  { %3353 = vrot.lane.b32.xlu1 %v3351_v48, %s4960_s18 }
0x2c16   :  { %v3354_v50 = vpop.permute.xlu1 %3353 }
0x2c17   :  { %v3356_v51 = vadd.f32 %v3354_v50, %v3346_v49 }
0x2c19   :  { %4946 = vtanh.f32 %v3356_v51 }
0x2c23   :  { %v4947_v16 = vpop.eup %4946 }
0x2c24   :  { %3359 = vrot.lane.b32.xlu0 %v4947_v16, %s4959_s17 }
0x2c96   :  { %v3360_v52 = vpop.permute.xlu0 %3359 }
0x2c97   :  { %v3362_v10 = vmul.f32 %v4945_v46, %v3360_v52 }
0x2c99   :  { %v3363_v55 = vmul.f32 %v3362_v10, %v3362_v10 }
0x2c9b   :  { %3365 = vrot.lane.b32.xlu1 %v3363_v55, %s4960_s18 }
0x2d0d   :  { %v3366_v56 = vpop.permute.xlu1 %3365 }
0x2d0e   :  { %v3368_v57 = vsel %vm903_vm3, %v3366_v56, 0.0 }
0x2d0f   :  { %3369 = vadd.xlane.f32.xlu0 %v3368_v57 }
0x2d9c   :  { %v3370_v58 = vpop.xlane.xlu0 %3369 }
0x2d9d   :  { %4948 = vrsqrt.f32 %v3370_v58  ;;  %vm3373_vm4 = vcmp.eq.f32.partialorder %v3370_v58, inf  ;;  %v3376_v61 = vand.u32 2147483648, %v3370_v58  ;;  %vm3375_vm5 = vcmp.eq.f32.partialorder %v3370_v58, 0.0 }
0x2da7   :  { %v4949_v59 = vpop.eup %4948 }
0x2da8   :  { %v3372_v60 = vmul.f32 %v4949_v59, %v3370_v58 }
0x2daa   :  { %v3374_v62 = vsel %vm3373_vm4, %v3370_v58, %v3372_v60 }
0x2dab   :  { %v3377_v13 = vsel %vm3375_vm5, %v3376_v61, %v3374_v62 }
0x2dac   :  { %v3378_v63 = vmax.f32 %v3377_v13, 1e-12 }
0x2dae   :  { %4950 = vrcp.f32 %v3378_v63 }
0x2db8   :  { %v4951_v14 = vpop.eup %4950 }
0x2db9   :  { %v3380_v30 = vmul.f32 %v4951_v14, %v3362_v10 }
0x2dbb   :  { %3386 = vrot.lane.b32.xlu1 %v3380_v30, %s4960_s18 }
0x2e2d   :  { %v3387_v21 = vpop.permute.xlu1 %3386 }
0x2e2e   :  { %v3388_v22 = vsel %vm903_vm3, %v3387_v21, 0  ;;  %3883 = vst.msk [vmem:[%s5702_s3] sm:$0xff] %vm903_vm3, %v3387_v21 }
0x2e2f   :  { %v3459_v24 = vand.u32 4294901760, %v3388_v22 }
0x2e31   :  { %v3460_v26 = vsub.f32 %v3388_v22, %v3459_v24 }
0x2e33   :  { %v3461_v27 = vand.u32 4294901760, %v3460_v26 }
0x2e35   :  { %v3462_v32 = vsub.f32 %v3460_v26, %v3461_v27 }
0x2e37   :  { %v3463_v43 = vand.u32 4294901760, %v3462_v32 }
0x2e39   :  { %4414 = vmatmul.mubr.f32.vlgmr.msra.gmra.mrb[20].mxu0 %v3463_v43 }
0x2e3a   :  { %4647 = vmatpush3.bf16.msra.mxu0 %v4646_v37  ;;  %4424 = vmatprep.mubr.msk.f32.mxu0 %vm4958_vm1, %v4956_v3 }
0x2e3b   :  { %4648 = vmatprep.subr.bf16.mxu0 %v4957_v5 }
0x2e3e   :  { %4650 = vmatpush3.bf16.msra.mxu0 %v4649_v15 }
0x2e3f   :  { %4651 = vmatprep.subr.bf16.mxu0 %v4957_v5 }
0x2e41   :  { %4425 = vmatmul.mubr.f32.vlgmr.msra.gmra.mrb[20].mxu0 %v3459_v24 }
0x2e42   :  { %4653 = vmatpush3.bf16.msra.mxu0 %v4652_v17  ;;  %4435 = vmatprep.mubr.msk.f32.mxu0 %vm4958_vm1, %v4956_v3 }
0x2e43   :  { %4654 = vmatprep.subr.bf16.mxu0 %v4957_v5 }
0x2e46   :  { %4656 = vmatpush3.bf16.msra.mxu0 %v4655_v20 }
0x2e47   :  { %4657 = vmatprep.subr.bf16.mxu0 %v4957_v5 }
0x2e49   :  { %4436 = vmatmul.mubr.f32.vlgmr.msra.gmra.mrb[20].mxu0 %v3460_v26 }
0x2e4a   :  { %4659 = vmatpush3.bf16.msra.mxu0 %v5657_v8  ;;  %4446 = vmatprep.mubr.msk.f32.mxu0 %vm4958_vm1, %v4956_v3 }
0x2e4b   :  { %4660 = vmatprep.subr.bf16.mxu0 %v4957_v5 }
0x2e4e   :  { %4662 = vmatpush3.bf16.msra.mxu0 %v4643_v35 }
0x2e4f   :  { %4663 = vmatprep.subr.bf16.mxu0 %v4957_v5 }
0x2e51   :  { %4447 = vmatmul.mubr.f32.vlgmr.msra.gmra.mrb[20].mxu0 %v3461_v27 }
0x2e52   :  { %4665 = vmatpush3.bf16.msra.mxu0 %v4664_v19  ;;  %4457 = vmatprep.mubr.msk.f32.mxu0 %vm4958_vm1, %v4956_v3 }
0x2e53   :  { %4666 = vmatprep.subr.bf16.mxu0 %v4957_v5 }
0x2e56   :  { %4668 = vmatpush3.bf16.msra.mxu0 %v4667_v7 }
0x2e57   :  { %4669 = vmatprep.subr.bf16.mxu0 %v4957_v5 }
0x2e59   :  { %4458 = vmatmul.mubr.f32.vlgmr.msra.gmra.mrb[20].mxu0 %v3459_v24 }
0x2e5a   :  { %4671 = vmatpush3.bf16.msra.mxu0 %v5657_v8  ;;  %4468 = vmatprep.mubr.msk.f32.mxu0 %vm4958_vm1, %v4956_v3 }
0x2e5b   :  { %4672 = vmatprep.subr.bf16.mxu0 %v4957_v5 }
0x2e5e   :  { %4674 = vmatpush3.bf16.msra.mxu0 %v4643_v35 }
0x2e61   :  { %4469 = vmatmul.mubr.f32.vlgmr.msra.gmra.mrb[20].mxu0 %v3459_v24 }
0x2f34   :  { %v3871_v45 = vpop.f32.mrb[20].mxu0 }
0x2f35   :  { %v3926_v28 = vmul.f32 -1.442695, %v3871_v45  ;;  %v4470_v46 = vpop.f32.mrb[21].mxu0 }
0x2f37   :  { %4952 = vpow2.f32 %v3926_v28 }
0x2f41   :  { %v4953_v47 = vpop.eup %4952 }
0x2f42   :  { %v3878_v48 = vadd.f32 1.0, %v4953_v47 }
0x2f44   :  { %4954 = vrcp.f32 %v3878_v48 }
0x2f4e   :  { %v4955_v49 = vpop.eup %4954 }
0x2f4f   :  { %3885 = vrot.lane.b32.xlu1 %v4955_v49, %s4960_s18 }
0x2fc1   :  { %v3886_v50 = vpop.permute.xlu1 %3885 }
0x2fc2   :  { %3889 = vst.msk [vmem:[%s5702_s3] sm:$0xff] %vm3888_vm6, %v3886_v50 }

</bundles_post_ra>
